<compile_context>
chip_gen: v6e
topology: v6e:2x2x1
jax: 0.10.0
libtpu: 0.0.40
codegen_flags: <defaults>
</compile_context>

<pallas_src>
import math

import jax
import jax.numpy as jnp
from jax import lax
from jax.experimental import pallas as pl
from jax.experimental.pallas import tpu as pltpu


# ----------------------------------------------------------------------------
# Kernel body.
# ----------------------------------------------------------------------------
def _decode_level(x_ref, w_ref, c_ref, g_ref, raw_ref, dec_ref, na, no):
    """1x1 conv + YOLO decode for one (batch, pixel-tile) block of one level.

    x_ref:   (C, TP)       bf16 activations, pixels on lanes
    w_ref:   (NO, C)       bf16 conv weight (VMEM resident)
    c_ref:   (NO, 8)       f32 packed per-row constants:
                              col0 bias, col1 linear scale (2*stride or 1),
                              col2 quadratic scale (4*anchor),
                              col3 x-row mask, col4 y-row mask
    g_ref:   (2, TP)       f32 per-pixel (grid - 0.5) * stride offsets
    raw_ref: (na, TP, no)  raw conv output (pre-sigmoid), transposed layout
    dec_ref: (na, TP, no)  decoded predictions, transposed layout
    """
    y = jnp.dot(w_ref[...], x_ref[...], preferred_element_type=jnp.float32)
    y = y + c_ref[:, 0:1]                                   # bias
    s = jax.nn.sigmoid(y)
    dec = (s * c_ref[:, 1:2]                                # xy linear / conf pass
           + (s * s) * c_ref[:, 2:3]                        # wh quadratic
           + c_ref[:, 3:4] * g_ref[0:1, :]                  # (gx - .5) * stride_x
           + c_ref[:, 4:5] * g_ref[1:2, :])                 # (gy - .5) * stride_y
    # Transpose each anchor's (no, TP) slab to (TP, no) on the XLU so HBM
    # outputs are already in the module's (bs, na, pixel, no) layout --
    # no post-kernel relayout pass over the outputs.
    for a in range(na):
        raw_ref[a] = y[a * no:(a + 1) * no, :].T.astype(raw_ref.dtype)
        dec_ref[a] = dec[a * no:(a + 1) * no, :].T.astype(dec_ref.dtype)


def _make_kernel(nl, na, no):
    def kernel(lvl_ref, til_ref, *refs):
        xs = refs[0 * nl:1 * nl]
        ws = refs[1 * nl:2 * nl]
        cs = refs[2 * nl:3 * nl]
        gs = refs[3 * nl:4 * nl]
        raws = refs[4 * nl:5 * nl]
        decs = refs[5 * nl:6 * nl]
        lvl = lvl_ref[pl.program_id(1)]
        for i in range(nl):
            @pl.when(lvl == i)
            def _(i=i):
                _decode_level(xs[i], ws[i], cs[i], gs[i], raws[i], decs[i],
                              na, no)
    return kernel


# ----------------------------------------------------------------------------
# Data-dependent index maps (driven by the two scalar-prefetch tables).
# ----------------------------------------------------------------------------
def _tile_index(level, n_tiles, t, lvl_ref, til_ref):
    l = lvl_ref[t]
    # Monotone-nondecreasing per batch sweep: levels already processed stay
    # pinned at their last tile, later levels at tile 0 -> revisited blocks
    # are never re-fetched (inputs) or clobbered (outputs).
    return jnp.where(l == level, til_ref[t],
                     jnp.where(l < level, 0, n_tiles - 1))


def _x_map(level, n_tiles):
    def idx(b, t, lvl_ref, til_ref):
        return (b, 0, _tile_index(level, n_tiles, t, lvl_ref, til_ref))
    return idx


def _g_map(level, n_tiles):
    def idx(b, t, lvl_ref, til_ref):
        return (0, _tile_index(level, n_tiles, t, lvl_ref, til_ref))
    return idx


def _out_map(level, n_tiles):
    def idx(b, t, lvl_ref, til_ref):
        return (b, 0, _tile_index(level, n_tiles, t, lvl_ref, til_ref), 0)
    return idx


def _pinned2(b, t, lvl_ref, til_ref):          # VMEM-resident small constants
    return (0, 0)


# ----------------------------------------------------------------------------
# Host-side helpers.
# ----------------------------------------------------------------------------
def _pick_tile(P, C, na, no, cap):
    """Largest 128-aligned pixel tile inside a ~24 MiB double-buffered budget
    (conservative for v7x's 64 MiB VMEM); full extent for small levels."""
    per_px = C * 2 + 2 * na * no * 4 + 2 * 4       # bf16 x + 2 f32 outs + gxy
    t = max(128, min(int(cap), (24 << 20) // (2 * per_px)))
    t = (t // 128) * 128
    return P if P <= t else t


def _level_constants(bias, anchors_i, no, sx, sy):
    NO = bias.shape[0]
    cidx = jnp.arange(NO, dtype=jnp.int32) % no
    aw = jnp.repeat(anchors_i[:, 0], no)
    ah = jnp.repeat(anchors_i[:, 1], no)
    a_lin = jnp.where(cidx == 0, 2.0 * sx,
             jnp.where(cidx == 1, 2.0 * sy,
              jnp.where(cidx >= 4, 1.0, 0.0))).astype(jnp.float32)
    a_quad = jnp.where(cidx == 2, 4.0 * aw,
              jnp.where(cidx == 3, 4.0 * ah, 0.0)).astype(jnp.float32)
    mx = (cidx == 0).astype(jnp.float32)
    my = (cidx == 1).astype(jnp.float32)
    z = jnp.zeros((NO,), jnp.float32)
    return jnp.stack([bias.astype(jnp.float32), a_lin, a_quad, mx, my, z, z, z],
                     axis=1)                                    # (NO, 8)


def _grid_offsets(P, nx, sx, sy):
    p = jnp.arange(P, dtype=jnp.int32)
    gx = (p % nx).astype(jnp.float32) * sx - 0.5 * sx
    gy = (p // nx).astype(jnp.float32) * sy - 0.5 * sy
    return jnp.stack([gx, gy], axis=0)                          # (2, P)


# ----------------------------------------------------------------------------
# Fused forward (all levels in one pallas_call).
# ----------------------------------------------------------------------------
def yolov5_head_forward(xs, weights, biases, anchors, H, W, *, tile_cap=2048):
    """Inference-mode forward; returns (z, x_list) like the PyTorch module."""
    nl = len(xs)
    na = anchors.shape[1]
    NO = weights[0].shape[0]
    no = NO // na
    bs = xs[0].shape[0]

    x_ops, w_ops, c_ops, g_ops = [], [], [], []
    x_specs, w_specs, c_specs, g_specs = [], [], [], []
    raw_specs, dec_specs, raw_shapes, dec_shapes = [], [], [], []
    meta, lvl_of, til_of = [], [], []

    for i, x in enumerate(xs):
        _, C, ny, nx = x.shape
        P = ny * nx
        sx = float(W) / float(nx)
        sy = float(H) / float(ny)
        TP = _pick_tile(P, C, na, no, tile_cap)
        T = pl.cdiv(P, TP)                 # cdiv grid: Pallas masks a partial tail
        lvl_of += [i] * T
        til_of += list(range(T))
        meta.append((ny, nx, P))

        # bf16 activations/weights -> native-rate MXU matmul, half the DMA.
        x_ops.append(x.reshape(bs, C, P).astype(jnp.bfloat16))
        w_ops.append(weights[i].astype(jnp.bfloat16))
        c_ops.append(_level_constants(biases[i], anchors[i], no, sx, sy))
        g_ops.append(_grid_offsets(P, nx, sx, sy))

        x_specs.append(pl.BlockSpec((None, C, TP), _x_map(i, T)))
        w_specs.append(pl.BlockSpec((NO, C), _pinned2))
        c_specs.append(pl.BlockSpec((NO, 8), _pinned2))
        g_specs.append(pl.BlockSpec((2, TP), _g_map(i, T)))
        raw_specs.append(pl.BlockSpec((None, na, TP, no), _out_map(i, T)))
        dec_specs.append(pl.BlockSpec((None, na, TP, no), _out_map(i, T)))
        # TODO(synk): emit bf16 outputs instead of f32 if the consumer allows it.
        raw_shapes.append(jax.ShapeDtypeStruct((bs, na, P, no), jnp.float32))
        dec_shapes.append(jax.ShapeDtypeStruct((bs, na, P, no), jnp.float32))

    T_total = len(lvl_of)
    outs = pl.pallas_call(
        _make_kernel(nl, na, no),
        out_shape=tuple(raw_shapes + dec_shapes),
        grid_spec=pltpu.PrefetchScalarGridSpec(
            num_scalar_prefetch=2,
            grid=(bs, T_total),
            in_specs=x_specs + w_specs + c_specs + g_specs,
            out_specs=raw_specs + dec_specs,
        ),
        compiler_params=pltpu.CompilerParams(
            # Batch axis may be split across TensorCores; the fused tile axis
            # must stay sequential (its output blocks are revisited).
            dimension_semantics=("parallel", "arbitrary"),
            vmem_limit_bytes=64 * 1024 * 1024),
    )(jnp.asarray(lvl_of, jnp.int32), jnp.asarray(til_of, jnp.int32),
      *x_ops, *w_ops, *c_ops, *g_ops)

    raws, zs = [], []
    for i in range(nl):
        ny, nx, P = meta[i]
        raws.append(outs[i].reshape(bs, na, ny, nx, no))        # free view
        zs.append(outs[nl + i].reshape(bs, na * P, no))         # free view
    return jnp.concatenate(zs, axis=1), raws


# ----------------------------------------------------------------------------
# Deterministic parameter init (mirrors nn.Conv2d default + reset_parameters).
# ----------------------------------------------------------------------------
def init_params(key, in_channels_list, na, no, nc):
    ws, bs_ = [], []
    stride = [8, 16, 32]
    for cin, s in zip(in_channels_list, stride):
        key, kw, kb = jax.random.split(key, 3)
        bound = 1.0 / math.sqrt(cin)
        w = jax.random.uniform(kw, (na * no, cin), jnp.float32, -bound, bound)
        b = jax.random.uniform(kb, (na * no,), jnp.float32, -bound, bound)
        b = b.reshape(na, no)
        b = b.at[:, 4].add(math.log(8.0 / (640.0 / s) ** 2))
        b = b.at[:, 5:5 + nc].add(math.log(0.6 / (nc - 0.99999)))
        ws.append(w)
        bs_.append(b.reshape(-1))
    return ws, bs_


# ----------------------------------------------------------------------------
# Pure-JAX reference of the PyTorch forward (for correctness checks).
# ----------------------------------------------------------------------------
def ref_forward(xs, weights, biases, anchors, H, W, cast_bf16=False):
    na = anchors.shape[1]
    no = weights[0].shape[0] // na
    z, raws = [], []
    for i, x in enumerate(xs):
        bs, C, ny, nx = x.shape
        xw, ww = x, weights[i]
        if cast_bf16:   # precision-matched reference for the bf16 MXU path
            xw = xw.astype(jnp.bfloat16).astype(jnp.float32)
            ww = ww.astype(jnp.bfloat16).astype(jnp.float32)
        y = jnp.einsum('bchw,oc->bohw', xw, ww,
                       precision=lax.Precision.HIGHEST)
        y = y + biases[i][None, :, None, None]
        y = y.reshape(bs, na, no, ny, nx).transpose(0, 1, 3, 4, 2)
        raws.append(y)

        stride = jnp.array([W / nx, H / ny], jnp.float32)
        gx, gy = jnp.meshgrid(jnp.arange(nx), jnp.arange(ny))
        grid = jnp.stack([gx, gy], -1).astype(jnp.float32)
        anchor_grid = anchors[i].reshape(1, na, 1, 1, 2)

        s = jax.nn.sigmoid(y)
        xy = (s[..., :2] * 2.0 - 0.5 + grid[None, None]) * stride
        wh = (s[..., 2:4] * 2.0) ** 2 * anchor_grid
        conf = s[..., 4:]
        yd = jnp.concatenate([xy, wh, conf], -1)
        z.append(yd.reshape(bs, na * ny * nx, no))
    return jnp.concatenate(z, 1), raws


# ----------------------------------------------------------------------------
if __name__ == "__main__":
    key = jax.random.PRNGKey(0)

    bs, nc = 2, 3
    anchors_list = [[10, 13, 16, 30, 33, 23],
                    [30, 61, 62, 45, 59, 119],
                    [116, 90, 156, 198, 373, 326]]
    na = len(anchors_list[0]) // 2
    no = nc + 5
    in_channels_list = [8, 16, 32]
    spatials = [(16, 16), (8, 8), (4, 4)]
    H = W = 128

    anchors = jnp.asarray(anchors_list, jnp.float32).reshape(len(anchors_list), -1, 2)

    key, *xkeys = jax.random.split(key, len(in_channels_list) + 1)
    xs = [jax.random.normal(k, (bs, cin, ny, nx), jnp.float32)
          for k, cin, (ny, nx) in zip(xkeys, in_channels_list, spatials)]
    weights, biases = init_params(key, in_channels_list, na, no, nc)

    # Tight check: reference with the same bf16-rounded inputs (isolates the
    # deliberate bf16 precision choice).  Loose check: plain f32 reference.
    z_bf, raws_bf = ref_forward(xs, weights, biases, anchors, H, W, cast_bf16=True)
    z_f32, raws_f32 = ref_forward(xs, weights, biases, anchors, H, W, cast_bf16=False)

    for cap in (2048, 128):   # cap=128 forces the largest level onto 2 pixel tiles
        z, raws = yolov5_head_forward(xs, weights, biases, anchors, H, W,
                                      tile_cap=cap)
        z = jax.block_until_ready(z)
        raws = [jax.block_until_ready(r) for r in raws]

        assert z.shape == z_bf.shape
        assert jnp.allclose(z, z_bf, atol=5e-2, rtol=1e-2), "decoded mismatch (tight)"
        assert jnp.allclose(z, z_f32, atol=1.0, rtol=1e-1), "decoded mismatch (loose)"
        for r, rb, rf in zip(raws, raws_bf, raws_f32):
            assert r.shape == rb.shape
            assert jnp.allclose(r, rb, atol=1e-2, rtol=1e-3), "raw mismatch (tight)"
            assert jnp.allclose(r, rf, atol=3e-1, rtol=5e-2), "raw mismatch (loose)"

    print("KERNEL_OK")
</pallas_src>

<mosaic_0001>
module attributes {stable_mosaic.version = 11 : i64} {
  func.func @kernel(%arg0: i32, %arg1: i32, %arg2: memref<3xi32, #tpu.memory_space<smem>>, %arg3: memref<3xi32, #tpu.memory_space<smem>>, %arg4: memref<1x8x256xbf16, #tpu.memory_space<vmem>>, %arg5: memref<1x16x64xbf16, #tpu.memory_space<vmem>>, %arg6: memref<1x32x16xbf16, #tpu.memory_space<vmem>>, %arg7: memref<24x8xbf16, #tpu.memory_space<vmem>>, %arg8: memref<24x16xbf16, #tpu.memory_space<vmem>>, %arg9: memref<24x32xbf16, #tpu.memory_space<vmem>>, %arg10: memref<24x8xf32, #tpu.memory_space<vmem>>, %arg11: memref<24x8xf32, #tpu.memory_space<vmem>>, %arg12: memref<24x8xf32, #tpu.memory_space<vmem>>, %arg13: memref<2x256xf32, #tpu.memory_space<vmem>>, %arg14: memref<2x64xf32, #tpu.memory_space<vmem>>, %arg15: memref<2x16xf32, #tpu.memory_space<vmem>>, %arg16: memref<1x3x256x8xf32, #tpu.memory_space<vmem>>, %arg17: memref<1x3x64x8xf32, #tpu.memory_space<vmem>>, %arg18: memref<1x3x16x8xf32, #tpu.memory_space<vmem>>, %arg19: memref<1x3x256x8xf32, #tpu.memory_space<vmem>>, %arg20: memref<1x3x64x8xf32, #tpu.memory_space<vmem>>, %arg21: memref<1x3x16x8xf32, #tpu.memory_space<vmem>>) attributes {dimension_semantics = [#tpu.dimension_semantics<parallel>, #tpu.dimension_semantics<arbitrary>], iteration_bounds = array<i64: 2, 3>, scalar_prefetch = 2 : i64, scratch_operands = 0 : i64, tpu.core_type = #tpu.core_type<tc>, window_params = [{transform_indices = @transform_0, window_bounds = array<i64: 1, 8, 256>}, {transform_indices = @transform_1, window_bounds = array<i64: 1, 16, 64>}, {transform_indices = @transform_2, window_bounds = array<i64: 1, 32, 16>}, {pipeline_mode = #tpu.pipeline_mode<synchronous>, transform_indices = @transform_3, window_bounds = array<i64: 24, 8>}, {pipeline_mode = #tpu.pipeline_mode<synchronous>, transform_indices = @transform_4, window_bounds = array<i64: 24, 16>}, {pipeline_mode = #tpu.pipeline_mode<synchronous>, transform_indices = @transform_5, window_bounds = array<i64: 24, 32>}, {pipeline_mode = #tpu.pipeline_mode<synchronous>, transform_indices = @transform_6, window_bounds = array<i64: 24, 8>}, {pipeline_mode = #tpu.pipeline_mode<synchronous>, transform_indices = @transform_7, window_bounds = array<i64: 24, 8>}, {pipeline_mode = #tpu.pipeline_mode<synchronous>, transform_indices = @transform_8, window_bounds = array<i64: 24, 8>}, {transform_indices = @transform_9, window_bounds = array<i64: 2, 256>}, {transform_indices = @transform_10, window_bounds = array<i64: 2, 64>}, {transform_indices = @transform_11, window_bounds = array<i64: 2, 16>}, {transform_indices = @transform_12, window_bounds = array<i64: 1, 3, 256, 8>}, {transform_indices = @transform_13, window_bounds = array<i64: 1, 3, 64, 8>}, {transform_indices = @transform_14, window_bounds = array<i64: 1, 3, 16, 8>}, {transform_indices = @transform_15, window_bounds = array<i64: 1, 3, 256, 8>}, {transform_indices = @transform_16, window_bounds = array<i64: 1, 3, 64, 8>}, {transform_indices = @transform_17, window_bounds = array<i64: 1, 3, 16, 8>}]} {
    %0 = arith.index_cast %arg1 : i32 to index
    %1 = memref.load %arg2[%0] : memref<3xi32, #tpu.memory_space<smem>>
    %c0_i32 = arith.constant 0 : i32
    %2 = arith.cmpi eq, %1, %c0_i32 : i32
    %3 = arith.extui %2 : i1 to i32
    %c0_i32_0 = arith.constant 0 : i32
    %4 = arith.cmpi ne, %3, %c0_i32_0 : i32
    scf.if %4 {
      %c0 = arith.constant 0 : index
      %c0_3 = arith.constant 0 : index
      %11 = vector.load %arg7[%c0, %c0_3] : memref<24x8xbf16, #tpu.memory_space<vmem>>, vector<24x8xbf16>
      %c0_4 = arith.constant 0 : index
      %c0_5 = arith.constant 0 : index
      %c0_6 = arith.constant 0 : index
      %12 = vector.load %arg4[%c0_4, %c0_5, %c0_6] : memref<1x8x256xbf16, #tpu.memory_space<vmem>>, vector<1x8x256xbf16>
      %13 = vector.shape_cast %12 : vector<1x8x256xbf16> to vector<8x256xbf16>
      %cst = arith.constant dense<0.000000e+00> : vector<24x256xf32>
      %14 = tpu.matmul %11, %13, %cst {dimension_numbers = #tpu.dot_dimension_numbers<[1], [0], [0], [1], [0, 0, 1, 1], [], []>} : vector<24x8xbf16>, vector<8x256xbf16>, vector<24x256xf32> -> vector<24x256xf32>
      %c0_7 = arith.constant 0 : index
      %c0_8 = arith.constant 0 : index
      %15 = vector.load %arg10[%c0_7, %c0_8] : memref<24x8xf32, #tpu.memory_space<vmem>>, vector<24x1xf32>
      %16 = vector.broadcast %15 : vector<24x1xf32> to vector<24x256xf32>
      %17 = arith.addf %14, %16 : vector<24x256xf32>
      %18 = arith.negf %17 : vector<24x256xf32>
      %19 = math.exp %18 : vector<24x256xf32>
      %cst_9 = arith.constant 1.000000e+00 : f32
      %20 = vector.broadcast %cst_9 : f32 to vector<24x256xf32>
      %21 = arith.addf %20, %19 : vector<24x256xf32>
      %22 = arith.divf %20, %21 : vector<24x256xf32>
      %c0_10 = arith.constant 0 : index
      %c1 = arith.constant 1 : index
      %23 = vector.load %arg10[%c0_10, %c1] : memref<24x8xf32, #tpu.memory_space<vmem>>, vector<24x1xf32>
      %24 = vector.broadcast %23 : vector<24x1xf32> to vector<24x256xf32>
      %25 = arith.mulf %22, %24 : vector<24x256xf32>
      %26 = arith.mulf %22, %22 : vector<24x256xf32>
      %c0_11 = arith.constant 0 : index
      %c2 = arith.constant 2 : index
      %27 = vector.load %arg10[%c0_11, %c2] : memref<24x8xf32, #tpu.memory_space<vmem>>, vector<24x1xf32>
      %28 = vector.broadcast %27 : vector<24x1xf32> to vector<24x256xf32>
      %29 = arith.mulf %26, %28 : vector<24x256xf32>
      %30 = arith.addf %25, %29 : vector<24x256xf32>
      %c0_12 = arith.constant 0 : index
      %c3 = arith.constant 3 : index
      %31 = vector.load %arg10[%c0_12, %c3] : memref<24x8xf32, #tpu.memory_space<vmem>>, vector<24x1xf32>
      %c0_13 = arith.constant 0 : index
      %c0_14 = arith.constant 0 : index
      %32 = vector.load %arg13[%c0_13, %c0_14] : memref<2x256xf32, #tpu.memory_space<vmem>>, vector<1x256xf32>
      %33 = vector.broadcast %31 : vector<24x1xf32> to vector<24x256xf32>
      %34 = vector.broadcast %32 : vector<1x256xf32> to vector<24x256xf32>
      %35 = arith.mulf %33, %34 : vector<24x256xf32>
      %36 = arith.addf %30, %35 : vector<24x256xf32>
      %c0_15 = arith.constant 0 : index
      %c4 = arith.constant 4 : index
      %37 = vector.load %arg10[%c0_15, %c4] : memref<24x8xf32, #tpu.memory_space<vmem>>, vector<24x1xf32>
      %c1_16 = arith.constant 1 : index
      %c0_17 = arith.constant 0 : index
      %38 = vector.load %arg13[%c1_16, %c0_17] : memref<2x256xf32, #tpu.memory_space<vmem>>, vector<1x256xf32>
      %39 = vector.broadcast %37 : vector<24x1xf32> to vector<24x256xf32>
      %40 = vector.broadcast %38 : vector<1x256xf32> to vector<24x256xf32>
      %41 = arith.mulf %39, %40 : vector<24x256xf32>
      %42 = arith.addf %36, %41 : vector<24x256xf32>
      %43 = vector.extract_strided_slice %17 {offsets = [0, 0], sizes = [8, 256], strides = [1, 1]} : vector<24x256xf32> to vector<8x256xf32>
      %44 = tpu.transpose %43, [1, 0] : vector<8x256xf32> -> vector<256x8xf32>
      %c0_18 = arith.constant 0 : index
      %c0_19 = arith.constant 0 : index
      %c0_20 = arith.constant 0 : index
      %c0_21 = arith.constant 0 : index
      %45 = vector.load %arg16[%c0_18, %c0_19, %c0_20, %c0_21] : memref<1x3x256x8xf32, #tpu.memory_space<vmem>>, vector<1x1x256x8xf32>
      %46 = vector.shape_cast %45 : vector<1x1x256x8xf32> to vector<256x8xf32>
      %47 = vector.shape_cast %44 : vector<256x8xf32> to vector<1x1x256x8xf32>
      tpu.vector_store %arg16[%c0_18, %c0_19, %c0_20, %c0_21], %47 {strides = array<i32>} : memref<1x3x256x8xf32, #tpu.memory_space<vmem>>, vector<1x1x256x8xf32>,
      %48 = vector.extract_strided_slice %42 {offsets = [0, 0], sizes = [8, 256], strides = [1, 1]} : vector<24x256xf32> to vector<8x256xf32>
      %49 = tpu.transpose %48, [1, 0] : vector<8x256xf32> -> vector<256x8xf32>
      %c0_22 = arith.constant 0 : index
      %c0_23 = arith.constant 0 : index
      %c0_24 = arith.constant 0 : index
      %c0_25 = arith.constant 0 : index
      %50 = vector.load %arg19[%c0_22, %c0_23, %c0_24, %c0_25] : memref<1x3x256x8xf32, #tpu.memory_space<vmem>>, vector<1x1x256x8xf32>
      %51 = vector.shape_cast %50 : vector<1x1x256x8xf32> to vector<256x8xf32>
      %52 = vector.shape_cast %49 : vector<256x8xf32> to vector<1x1x256x8xf32>
      tpu.vector_store %arg19[%c0_22, %c0_23, %c0_24, %c0_25], %52 {strides = array<i32>} : memref<1x3x256x8xf32, #tpu.memory_space<vmem>>, vector<1x1x256x8xf32>,
      %53 = vector.extract_strided_slice %17 {offsets = [8, 0], sizes = [8, 256], strides = [1, 1]} : vector<24x256xf32> to vector<8x256xf32>
      %54 = tpu.transpose %53, [1, 0] : vector<8x256xf32> -> vector<256x8xf32>
      %c0_26 = arith.constant 0 : index
      %c1_27 = arith.constant 1 : index
      %c0_28 = arith.constant 0 : index
      %c0_29 = arith.constant 0 : index
      %55 = vector.load %arg16[%c0_26, %c1_27, %c0_28, %c0_29] : memref<1x3x256x8xf32, #tpu.memory_space<vmem>>, vector<1x1x256x8xf32>
      %56 = vector.shape_cast %55 : vector<1x1x256x8xf32> to vector<256x8xf32>
      %57 = vector.shape_cast %54 : vector<256x8xf32> to vector<1x1x256x8xf32>
      tpu.vector_store %arg16[%c0_26, %c1_27, %c0_28, %c0_29], %57 {strides = array<i32>} : memref<1x3x256x8xf32, #tpu.memory_space<vmem>>, vector<1x1x256x8xf32>,
      %58 = vector.extract_strided_slice %42 {offsets = [8, 0], sizes = [8, 256], strides = [1, 1]} : vector<24x256xf32> to vector<8x256xf32>
      %59 = tpu.transpose %58, [1, 0] : vector<8x256xf32> -> vector<256x8xf32>
      %c0_30 = arith.constant 0 : index
      %c1_31 = arith.constant 1 : index
      %c0_32 = arith.constant 0 : index
      %c0_33 = arith.constant 0 : index
      %60 = vector.load %arg19[%c0_30, %c1_31, %c0_32, %c0_33] : memref<1x3x256x8xf32, #tpu.memory_space<vmem>>, vector<1x1x256x8xf32>
      %61 = vector.shape_cast %60 : vector<1x1x256x8xf32> to vector<256x8xf32>
      %62 = vector.shape_cast %59 : vector<256x8xf32> to vector<1x1x256x8xf32>
      tpu.vector_store %arg19[%c0_30, %c1_31, %c0_32, %c0_33], %62 {strides = array<i32>} : memref<1x3x256x8xf32, #tpu.memory_space<vmem>>, vector<1x1x256x8xf32>,
      %63 = vector.extract_strided_slice %17 {offsets = [16, 0], sizes = [8, 256], strides = [1, 1]} : vector<24x256xf32> to vector<8x256xf32>
      %64 = tpu.transpose %63, [1, 0] : vector<8x256xf32> -> vector<256x8xf32>
      %c0_34 = arith.constant 0 : index
      %c2_35 = arith.constant 2 : index
      %c0_36 = arith.constant 0 : index
      %c0_37 = arith.constant 0 : index
      %65 = vector.load %arg16[%c0_34, %c2_35, %c0_36, %c0_37] : memref<1x3x256x8xf32, #tpu.memory_space<vmem>>, vector<1x1x256x8xf32>
      %66 = vector.shape_cast %65 : vector<1x1x256x8xf32> to vector<256x8xf32>
      %67 = vector.shape_cast %64 : vector<256x8xf32> to vector<1x1x256x8xf32>
      tpu.vector_store %arg16[%c0_34, %c2_35, %c0_36, %c0_37], %67 {strides = array<i32>} : memref<1x3x256x8xf32, #tpu.memory_space<vmem>>, vector<1x1x256x8xf32>,
      %68 = vector.extract_strided_slice %42 {offsets = [16, 0], sizes = [8, 256], strides = [1, 1]} : vector<24x256xf32> to vector<8x256xf32>
      %69 = tpu.transpose %68, [1, 0] : vector<8x256xf32> -> vector<256x8xf32>
      %c0_38 = arith.constant 0 : index
      %c2_39 = arith.constant 2 : index
      %c0_40 = arith.constant 0 : index
      %c0_41 = arith.constant 0 : index
      %70 = vector.load %arg19[%c0_38, %c2_39, %c0_40, %c0_41] : memref<1x3x256x8xf32, #tpu.memory_space<vmem>>, vector<1x1x256x8xf32>
      %71 = vector.shape_cast %70 : vector<1x1x256x8xf32> to vector<256x8xf32>
      %72 = vector.shape_cast %69 : vector<256x8xf32> to vector<1x1x256x8xf32>
      tpu.vector_store %arg19[%c0_38, %c2_39, %c0_40, %c0_41], %72 {strides = array<i32>} : memref<1x3x256x8xf32, #tpu.memory_space<vmem>>, vector<1x1x256x8xf32>,
    } else {
    }
    %c1_i32 = arith.constant 1 : i32
    %5 = arith.cmpi eq, %1, %c1_i32 : i32
    %6 = arith.extui %5 : i1 to i32
    %c0_i32_1 = arith.constant 0 : i32
    %7 = arith.cmpi ne, %6, %c0_i32_1 : i32
    scf.if %7 {
      %c0 = arith.constant 0 : index
      %c0_3 = arith.constant 0 : index
      %11 = vector.load %arg8[%c0, %c0_3] : memref<24x16xbf16, #tpu.memory_space<vmem>>, vector<24x16xbf16>
      %c0_4 = arith.constant 0 : index
      %c0_5 = arith.constant 0 : index
      %c0_6 = arith.constant 0 : index
      %12 = vector.load %arg5[%c0_4, %c0_5, %c0_6] : memref<1x16x64xbf16, #tpu.memory_space<vmem>>, vector<1x16x64xbf16>
      %13 = vector.shape_cast %12 : vector<1x16x64xbf16> to vector<16x64xbf16>
      %cst = arith.constant dense<0.000000e+00> : vector<24x64xf32>
      %14 = tpu.matmul %11, %13, %cst {dimension_numbers = #tpu.dot_dimension_numbers<[1], [0], [0], [1], [0, 0, 1, 1], [], []>} : vector<24x16xbf16>, vector<16x64xbf16>, vector<24x64xf32> -> vector<24x64xf32>
      %c0_7 = arith.constant 0 : index
      %c0_8 = arith.constant 0 : index
      %15 = vector.load %arg11[%c0_7, %c0_8] : memref<24x8xf32, #tpu.memory_space<vmem>>, vector<24x1xf32>
      %16 = vector.broadcast %15 : vector<24x1xf32> to vector<24x64xf32>
      %17 = arith.addf %14, %16 : vector<24x64xf32>
      %18 = arith.negf %17 : vector<24x64xf32>
      %19 = math.exp %18 : vector<24x64xf32>
      %cst_9 = arith.constant 1.000000e+00 : f32
      %20 = vector.broadcast %cst_9 : f32 to vector<24x64xf32>
      %21 = arith.addf %20, %19 : vector<24x64xf32>
      %22 = arith.divf %20, %21 : vector<24x64xf32>
      %c0_10 = arith.constant 0 : index
      %c1 = arith.constant 1 : index
      %23 = vector.load %arg11[%c0_10, %c1] : memref<24x8xf32, #tpu.memory_space<vmem>>, vector<24x1xf32>
      %24 = vector.broadcast %23 : vector<24x1xf32> to vector<24x64xf32>
      %25 = arith.mulf %22, %24 : vector<24x64xf32>
      %26 = arith.mulf %22, %22 : vector<24x64xf32>
      %c0_11 = arith.constant 0 : index
      %c2 = arith.constant 2 : index
      %27 = vector.load %arg11[%c0_11, %c2] : memref<24x8xf32, #tpu.memory_space<vmem>>, vector<24x1xf32>
      %28 = vector.broadcast %27 : vector<24x1xf32> to vector<24x64xf32>
      %29 = arith.mulf %26, %28 : vector<24x64xf32>
      %30 = arith.addf %25, %29 : vector<24x64xf32>
      %c0_12 = arith.constant 0 : index
      %c3 = arith.constant 3 : index
      %31 = vector.load %arg11[%c0_12, %c3] : memref<24x8xf32, #tpu.memory_space<vmem>>, vector<24x1xf32>
      %c0_13 = arith.constant 0 : index
      %c0_14 = arith.constant 0 : index
      %32 = vector.load %arg14[%c0_13, %c0_14] : memref<2x64xf32, #tpu.memory_space<vmem>>, vector<1x64xf32>
      %33 = vector.broadcast %31 : vector<24x1xf32> to vector<24x64xf32>
      %34 = vector.broadcast %32 : vector<1x64xf32> to vector<24x64xf32>
      %35 = arith.mulf %33, %34 : vector<24x64xf32>
      %36 = arith.addf %30, %35 : vector<24x64xf32>
      %c0_15 = arith.constant 0 : index
      %c4 = arith.constant 4 : index
      %37 = vector.load %arg11[%c0_15, %c4] : memref<24x8xf32, #tpu.memory_space<vmem>>, vector<24x1xf32>
      %c1_16 = arith.constant 1 : index
      %c0_17 = arith.constant 0 : index
      %38 = vector.load %arg14[%c1_16, %c0_17] : memref<2x64xf32, #tpu.memory_space<vmem>>, vector<1x64xf32>
      %39 = vector.broadcast %37 : vector<24x1xf32> to vector<24x64xf32>
      %40 = vector.broadcast %38 : vector<1x64xf32> to vector<24x64xf32>
      %41 = arith.mulf %39, %40 : vector<24x64xf32>
      %42 = arith.addf %36, %41 : vector<24x64xf32>
      %43 = vector.extract_strided_slice %17 {offsets = [0, 0], sizes = [8, 64], strides = [1, 1]} : vector<24x64xf32> to vector<8x64xf32>
      %44 = tpu.transpose %43, [1, 0] : vector<8x64xf32> -> vector<64x8xf32>
      %c0_18 = arith.constant 0 : index
      %c0_19 = arith.constant 0 : index
      %c0_20 = arith.constant 0 : index
      %c0_21 = arith.constant 0 : index
      %45 = vector.load %arg17[%c0_18, %c0_19, %c0_20, %c0_21] : memref<1x3x64x8xf32, #tpu.memory_space<vmem>>, vector<1x1x64x8xf32>
      %46 = vector.shape_cast %45 : vector<1x1x64x8xf32> to vector<64x8xf32>
      %47 = vector.shape_cast %44 : vector<64x8xf32> to vector<1x1x64x8xf32>
      tpu.vector_store %arg17[%c0_18, %c0_19, %c0_20, %c0_21], %47 {strides = array<i32>} : memref<1x3x64x8xf32, #tpu.memory_space<vmem>>, vector<1x1x64x8xf32>,
      %48 = vector.extract_strided_slice %42 {offsets = [0, 0], sizes = [8, 64], strides = [1, 1]} : vector<24x64xf32> to vector<8x64xf32>
      %49 = tpu.transpose %48, [1, 0] : vector<8x64xf32> -> vector<64x8xf32>
      %c0_22 = arith.constant 0 : index
      %c0_23 = arith.constant 0 : index
      %c0_24 = arith.constant 0 : index
      %c0_25 = arith.constant 0 : index
      %50 = vector.load %arg20[%c0_22, %c0_23, %c0_24, %c0_25] : memref<1x3x64x8xf32, #tpu.memory_space<vmem>>, vector<1x1x64x8xf32>
      %51 = vector.shape_cast %50 : vector<1x1x64x8xf32> to vector<64x8xf32>
      %52 = vector.shape_cast %49 : vector<64x8xf32> to vector<1x1x64x8xf32>
      tpu.vector_store %arg20[%c0_22, %c0_23, %c0_24, %c0_25], %52 {strides = array<i32>} : memref<1x3x64x8xf32, #tpu.memory_space<vmem>>, vector<1x1x64x8xf32>,
      %53 = vector.extract_strided_slice %17 {offsets = [8, 0], sizes = [8, 64], strides = [1, 1]} : vector<24x64xf32> to vector<8x64xf32>
      %54 = tpu.transpose %53, [1, 0] : vector<8x64xf32> -> vector<64x8xf32>
      %c0_26 = arith.constant 0 : index
      %c1_27 = arith.constant 1 : index
      %c0_28 = arith.constant 0 : index
      %c0_29 = arith.constant 0 : index
      %55 = vector.load %arg17[%c0_26, %c1_27, %c0_28, %c0_29] : memref<1x3x64x8xf32, #tpu.memory_space<vmem>>, vector<1x1x64x8xf32>
      %56 = vector.shape_cast %55 : vector<1x1x64x8xf32> to vector<64x8xf32>
      %57 = vector.shape_cast %54 : vector<64x8xf32> to vector<1x1x64x8xf32>
      tpu.vector_store %arg17[%c0_26, %c1_27, %c0_28, %c0_29], %57 {strides = array<i32>} : memref<1x3x64x8xf32, #tpu.memory_space<vmem>>, vector<1x1x64x8xf32>,
      %58 = vector.extract_strided_slice %42 {offsets = [8, 0], sizes = [8, 64], strides = [1, 1]} : vector<24x64xf32> to vector<8x64xf32>
      %59 = tpu.transpose %58, [1, 0] : vector<8x64xf32> -> vector<64x8xf32>
      %c0_30 = arith.constant 0 : index
      %c1_31 = arith.constant 1 : index
      %c0_32 = arith.constant 0 : index
      %c0_33 = arith.constant 0 : index
      %60 = vector.load %arg20[%c0_30, %c1_31, %c0_32, %c0_33] : memref<1x3x64x8xf32, #tpu.memory_space<vmem>>, vector<1x1x64x8xf32>
      %61 = vector.shape_cast %60 : vector<1x1x64x8xf32> to vector<64x8xf32>
      %62 = vector.shape_cast %59 : vector<64x8xf32> to vector<1x1x64x8xf32>
      tpu.vector_store %arg20[%c0_30, %c1_31, %c0_32, %c0_33], %62 {strides = array<i32>} : memref<1x3x64x8xf32, #tpu.memory_space<vmem>>, vector<1x1x64x8xf32>,
      %63 = vector.extract_strided_slice %17 {offsets = [16, 0], sizes = [8, 64], strides = [1, 1]} : vector<24x64xf32> to vector<8x64xf32>
      %64 = tpu.transpose %63, [1, 0] : vector<8x64xf32> -> vector<64x8xf32>
      %c0_34 = arith.constant 0 : index
      %c2_35 = arith.constant 2 : index
      %c0_36 = arith.constant 0 : index
      %c0_37 = arith.constant 0 : index
      %65 = vector.load %arg17[%c0_34, %c2_35, %c0_36, %c0_37] : memref<1x3x64x8xf32, #tpu.memory_space<vmem>>, vector<1x1x64x8xf32>
      %66 = vector.shape_cast %65 : vector<1x1x64x8xf32> to vector<64x8xf32>
      %67 = vector.shape_cast %64 : vector<64x8xf32> to vector<1x1x64x8xf32>
      tpu.vector_store %arg17[%c0_34, %c2_35, %c0_36, %c0_37], %67 {strides = array<i32>} : memref<1x3x64x8xf32, #tpu.memory_space<vmem>>, vector<1x1x64x8xf32>,
      %68 = vector.extract_strided_slice %42 {offsets = [16, 0], sizes = [8, 64], strides = [1, 1]} : vector<24x64xf32> to vector<8x64xf32>
      %69 = tpu.transpose %68, [1, 0] : vector<8x64xf32> -> vector<64x8xf32>
      %c0_38 = arith.constant 0 : index
      %c2_39 = arith.constant 2 : index
      %c0_40 = arith.constant 0 : index
      %c0_41 = arith.constant 0 : index
      %70 = vector.load %arg20[%c0_38, %c2_39, %c0_40, %c0_41] : memref<1x3x64x8xf32, #tpu.memory_space<vmem>>, vector<1x1x64x8xf32>
      %71 = vector.shape_cast %70 : vector<1x1x64x8xf32> to vector<64x8xf32>
      %72 = vector.shape_cast %69 : vector<64x8xf32> to vector<1x1x64x8xf32>
      tpu.vector_store %arg20[%c0_38, %c2_39, %c0_40, %c0_41], %72 {strides = array<i32>} : memref<1x3x64x8xf32, #tpu.memory_space<vmem>>, vector<1x1x64x8xf32>,
    } else {
    }
    %c2_i32 = arith.constant 2 : i32
    %8 = arith.cmpi eq, %1, %c2_i32 : i32
    %9 = arith.extui %8 : i1 to i32
    %c0_i32_2 = arith.constant 0 : i32
    %10 = arith.cmpi ne, %9, %c0_i32_2 : i32
    scf.if %10 {
      %c0 = arith.constant 0 : index
      %c0_3 = arith.constant 0 : index
      %11 = vector.load %arg9[%c0, %c0_3] : memref<24x32xbf16, #tpu.memory_space<vmem>>, vector<24x32xbf16>
      %c0_4 = arith.constant 0 : index
      %c0_5 = arith.constant 0 : index
      %c0_6 = arith.constant 0 : index
      %12 = vector.load %arg6[%c0_4, %c0_5, %c0_6] : memref<1x32x16xbf16, #tpu.memory_space<vmem>>, vector<1x32x16xbf16>
      %13 = vector.shape_cast %12 : vector<1x32x16xbf16> to vector<32x16xbf16>
      %cst = arith.constant dense<0.000000e+00> : vector<24x16xf32>
      %14 = tpu.matmul %11, %13, %cst {dimension_numbers = #tpu.dot_dimension_numbers<[1], [0], [0], [1], [0, 0, 1, 1], [], []>} : vector<24x32xbf16>, vector<32x16xbf16>, vector<24x16xf32> -> vector<24x16xf32>
      %c0_7 = arith.constant 0 : index
      %c0_8 = arith.constant 0 : index
      %15 = vector.load %arg12[%c0_7, %c0_8] : memref<24x8xf32, #tpu.memory_space<vmem>>, vector<24x1xf32>
      %16 = vector.broadcast %15 : vector<24x1xf32> to vector<24x16xf32>
      %17 = arith.addf %14, %16 : vector<24x16xf32>
      %18 = arith.negf %17 : vector<24x16xf32>
      %19 = math.exp %18 : vector<24x16xf32>
      %cst_9 = arith.constant 1.000000e+00 : f32
      %20 = vector.broadcast %cst_9 : f32 to vector<24x16xf32>
      %21 = arith.addf %20, %19 : vector<24x16xf32>
      %22 = arith.divf %20, %21 : vector<24x16xf32>
      %c0_10 = arith.constant 0 : index
      %c1 = arith.constant 1 : index
      %23 = vector.load %arg12[%c0_10, %c1] : memref<24x8xf32, #tpu.memory_space<vmem>>, vector<24x1xf32>
      %24 = vector.broadcast %23 : vector<24x1xf32> to vector<24x16xf32>
      %25 = arith.mulf %22, %24 : vector<24x16xf32>
      %26 = arith.mulf %22, %22 : vector<24x16xf32>
      %c0_11 = arith.constant 0 : index
      %c2 = arith.constant 2 : index
      %27 = vector.load %arg12[%c0_11, %c2] : memref<24x8xf32, #tpu.memory_space<vmem>>, vector<24x1xf32>
      %28 = vector.broadcast %27 : vector<24x1xf32> to vector<24x16xf32>
      %29 = arith.mulf %26, %28 : vector<24x16xf32>
      %30 = arith.addf %25, %29 : vector<24x16xf32>
      %c0_12 = arith.constant 0 : index
      %c3 = arith.constant 3 : index
      %31 = vector.load %arg12[%c0_12, %c3] : memref<24x8xf32, #tpu.memory_space<vmem>>, vector<24x1xf32>
      %c0_13 = arith.constant 0 : index
      %c0_14 = arith.constant 0 : index
      %32 = vector.load %arg15[%c0_13, %c0_14] : memref<2x16xf32, #tpu.memory_space<vmem>>, vector<1x16xf32>
      %33 = vector.broadcast %31 : vector<24x1xf32> to vector<24x16xf32>
      %34 = vector.broadcast %32 : vector<1x16xf32> to vector<24x16xf32>
      %35 = arith.mulf %33, %34 : vector<24x16xf32>
      %36 = arith.addf %30, %35 : vector<24x16xf32>
      %c0_15 = arith.constant 0 : index
      %c4 = arith.constant 4 : index
      %37 = vector.load %arg12[%c0_15, %c4] : memref<24x8xf32, #tpu.memory_space<vmem>>, vector<24x1xf32>
      %c1_16 = arith.constant 1 : index
      %c0_17 = arith.constant 0 : index
      %38 = vector.load %arg15[%c1_16, %c0_17] : memref<2x16xf32, #tpu.memory_space<vmem>>, vector<1x16xf32>
      %39 = vector.broadcast %37 : vector<24x1xf32> to vector<24x16xf32>
      %40 = vector.broadcast %38 : vector<1x16xf32> to vector<24x16xf32>
      %41 = arith.mulf %39, %40 : vector<24x16xf32>
      %42 = arith.addf %36, %41 : vector<24x16xf32>
      %43 = vector.extract_strided_slice %17 {offsets = [0, 0], sizes = [8, 16], strides = [1, 1]} : vector<24x16xf32> to vector<8x16xf32>
      %44 = tpu.transpose %43, [1, 0] : vector<8x16xf32> -> vector<16x8xf32>
      %c0_18 = arith.constant 0 : index
      %c0_19 = arith.constant 0 : index
      %c0_20 = arith.constant 0 : index
      %c0_21 = arith.constant 0 : index
      %45 = vector.load %arg18[%c0_18, %c0_19, %c0_20, %c0_21] : memref<1x3x16x8xf32, #tpu.memory_space<vmem>>, vector<1x1x16x8xf32>
      %46 = vector.shape_cast %45 : vector<1x1x16x8xf32> to vector<16x8xf32>
      %47 = vector.shape_cast %44 : vector<16x8xf32> to vector<1x1x16x8xf32>
      tpu.vector_store %arg18[%c0_18, %c0_19, %c0_20, %c0_21], %47 {strides = array<i32>} : memref<1x3x16x8xf32, #tpu.memory_space<vmem>>, vector<1x1x16x8xf32>,
      %48 = vector.extract_strided_slice %42 {offsets = [0, 0], sizes = [8, 16], strides = [1, 1]} : vector<24x16xf32> to vector<8x16xf32>
      %49 = tpu.transpose %48, [1, 0] : vector<8x16xf32> -> vector<16x8xf32>
      %c0_22 = arith.constant 0 : index
      %c0_23 = arith.constant 0 : index
      %c0_24 = arith.constant 0 : index
      %c0_25 = arith.constant 0 : index
      %50 = vector.load %arg21[%c0_22, %c0_23, %c0_24, %c0_25] : memref<1x3x16x8xf32, #tpu.memory_space<vmem>>, vector<1x1x16x8xf32>
      %51 = vector.shape_cast %50 : vector<1x1x16x8xf32> to vector<16x8xf32>
      %52 = vector.shape_cast %49 : vector<16x8xf32> to vector<1x1x16x8xf32>
      tpu.vector_store %arg21[%c0_22, %c0_23, %c0_24, %c0_25], %52 {strides = array<i32>} : memref<1x3x16x8xf32, #tpu.memory_space<vmem>>, vector<1x1x16x8xf32>,
      %53 = vector.extract_strided_slice %17 {offsets = [8, 0], sizes = [8, 16], strides = [1, 1]} : vector<24x16xf32> to vector<8x16xf32>
      %54 = tpu.transpose %53, [1, 0] : vector<8x16xf32> -> vector<16x8xf32>
      %c0_26 = arith.constant 0 : index
      %c1_27 = arith.constant 1 : index
      %c0_28 = arith.constant 0 : index
      %c0_29 = arith.constant 0 : index
      %55 = vector.load %arg18[%c0_26, %c1_27, %c0_28, %c0_29] : memref<1x3x16x8xf32, #tpu.memory_space<vmem>>, vector<1x1x16x8xf32>
      %56 = vector.shape_cast %55 : vector<1x1x16x8xf32> to vector<16x8xf32>
      %57 = vector.shape_cast %54 : vector<16x8xf32> to vector<1x1x16x8xf32>
      tpu.vector_store %arg18[%c0_26, %c1_27, %c0_28, %c0_29], %57 {strides = array<i32>} : memref<1x3x16x8xf32, #tpu.memory_space<vmem>>, vector<1x1x16x8xf32>,
      %58 = vector.extract_strided_slice %42 {offsets = [8, 0], sizes = [8, 16], strides = [1, 1]} : vector<24x16xf32> to vector<8x16xf32>
      %59 = tpu.transpose %58, [1, 0] : vector<8x16xf32> -> vector<16x8xf32>
      %c0_30 = arith.constant 0 : index
      %c1_31 = arith.constant 1 : index
      %c0_32 = arith.constant 0 : index
      %c0_33 = arith.constant 0 : index
      %60 = vector.load %arg21[%c0_30, %c1_31, %c0_32, %c0_33] : memref<1x3x16x8xf32, #tpu.memory_space<vmem>>, vector<1x1x16x8xf32>
      %61 = vector.shape_cast %60 : vector<1x1x16x8xf32> to vector<16x8xf32>
      %62 = vector.shape_cast %59 : vector<16x8xf32> to vector<1x1x16x8xf32>
      tpu.vector_store %arg21[%c0_30, %c1_31, %c0_32, %c0_33], %62 {strides = array<i32>} : memref<1x3x16x8xf32, #tpu.memory_space<vmem>>, vector<1x1x16x8xf32>,
      %63 = vector.extract_strided_slice %17 {offsets = [16, 0], sizes = [8, 16], strides = [1, 1]} : vector<24x16xf32> to vector<8x16xf32>
      %64 = tpu.transpose %63, [1, 0] : vector<8x16xf32> -> vector<16x8xf32>
      %c0_34 = arith.constant 0 : index
      %c2_35 = arith.constant 2 : index
      %c0_36 = arith.constant 0 : index
      %c0_37 = arith.constant 0 : index
      %65 = vector.load %arg18[%c0_34, %c2_35, %c0_36, %c0_37] : memref<1x3x16x8xf32, #tpu.memory_space<vmem>>, vector<1x1x16x8xf32>
      %66 = vector.shape_cast %65 : vector<1x1x16x8xf32> to vector<16x8xf32>
      %67 = vector.shape_cast %64 : vector<16x8xf32> to vector<1x1x16x8xf32>
      tpu.vector_store %arg18[%c0_34, %c2_35, %c0_36, %c0_37], %67 {strides = array<i32>} : memref<1x3x16x8xf32, #tpu.memory_space<vmem>>, vector<1x1x16x8xf32>,
      %68 = vector.extract_strided_slice %42 {offsets = [16, 0], sizes = [8, 16], strides = [1, 1]} : vector<24x16xf32> to vector<8x16xf32>
      %69 = tpu.transpose %68, [1, 0] : vector<8x16xf32> -> vector<16x8xf32>
      %c0_38 = arith.constant 0 : index
      %c2_39 = arith.constant 2 : index
      %c0_40 = arith.constant 0 : index
      %c0_41 = arith.constant 0 : index
      %70 = vector.load %arg21[%c0_38, %c2_39, %c0_40, %c0_41] : memref<1x3x16x8xf32, #tpu.memory_space<vmem>>, vector<1x1x16x8xf32>
      %71 = vector.shape_cast %70 : vector<1x1x16x8xf32> to vector<16x8xf32>
      %72 = vector.shape_cast %69 : vector<16x8xf32> to vector<1x1x16x8xf32>
      tpu.vector_store %arg21[%c0_38, %c2_39, %c0_40, %c0_41], %72 {strides = array<i32>} : memref<1x3x16x8xf32, #tpu.memory_space<vmem>>, vector<1x1x16x8xf32>,
    } else {
    }
    return
  }
  func.func @transform_0(%arg0: i32, %arg1: i32, %arg2: memref<3xi32, #tpu.memory_space<smem>>, %arg3: memref<3xi32, #tpu.memory_space<smem>>) -> (i32, i32, i32) {
    %0 = arith.index_cast %arg1 : i32 to index
    %1 = memref.load %arg2[%0] : memref<3xi32, #tpu.memory_space<smem>>
    %c0_i32 = arith.constant 0 : i32
    %2 = arith.cmpi eq, %1, %c0_i32 : i32
    %3 = arith.index_cast %arg1 : i32 to index
    %4 = memref.load %arg3[%3] : memref<3xi32, #tpu.memory_space<smem>>
    %c0_i32_0 = arith.constant 0 : i32
    %5 = arith.cmpi slt, %1, %c0_i32_0 : i32
    %c0_i32_1 = arith.constant 0 : i32
    %c0_i32_2 = arith.constant 0 : i32
    %6 = arith.select %5, %c0_i32_1, %c0_i32_2 : i32
    %7 = arith.select %2, %4, %6 : i32
    %c0_i32_3 = arith.constant 0 : i32
    %c0_i32_4 = arith.constant 0 : i32
    return %arg0, %c0_i32_3, %7 : i32, i32, i32
  }
  func.func @transform_1(%arg0: i32, %arg1: i32, %arg2: memref<3xi32, #tpu.memory_space<smem>>, %arg3: memref<3xi32, #tpu.memory_space<smem>>) -> (i32, i32, i32) {
    %0 = arith.index_cast %arg1 : i32 to index
    %1 = memref.load %arg2[%0] : memref<3xi32, #tpu.memory_space<smem>>
    %c1_i32 = arith.constant 1 : i32
    %2 = arith.cmpi eq, %1, %c1_i32 : i32
    %3 = arith.index_cast %arg1 : i32 to index
    %4 = memref.load %arg3[%3] : memref<3xi32, #tpu.memory_space<smem>>
    %c1_i32_0 = arith.constant 1 : i32
    %5 = arith.cmpi slt, %1, %c1_i32_0 : i32
    %c0_i32 = arith.constant 0 : i32
    %c0_i32_1 = arith.constant 0 : i32
    %6 = arith.select %5, %c0_i32, %c0_i32_1 : i32
    %7 = arith.select %2, %4, %6 : i32
    %c0_i32_2 = arith.constant 0 : i32
    %c0_i32_3 = arith.constant 0 : i32
    return %arg0, %c0_i32_2, %7 : i32, i32, i32
  }
  func.func @transform_2(%arg0: i32, %arg1: i32, %arg2: memref<3xi32, #tpu.memory_space<smem>>, %arg3: memref<3xi32, #tpu.memory_space<smem>>) -> (i32, i32, i32) {
    %0 = arith.index_cast %arg1 : i32 to index
    %1 = memref.load %arg2[%0] : memref<3xi32, #tpu.memory_space<smem>>
    %c2_i32 = arith.constant 2 : i32
    %2 = arith.cmpi eq, %1, %c2_i32 : i32
    %3 = arith.index_cast %arg1 : i32 to index
    %4 = memref.load %arg3[%3] : memref<3xi32, #tpu.memory_space<smem>>
    %c2_i32_0 = arith.constant 2 : i32
    %5 = arith.cmpi slt, %1, %c2_i32_0 : i32
    %c0_i32 = arith.constant 0 : i32
    %c0_i32_1 = arith.constant 0 : i32
    %6 = arith.select %5, %c0_i32, %c0_i32_1 : i32
    %7 = arith.select %2, %4, %6 : i32
    %c0_i32_2 = arith.constant 0 : i32
    %c0_i32_3 = arith.constant 0 : i32
    return %arg0, %c0_i32_2, %7 : i32, i32, i32
  }
  func.func @transform_3(%arg0: i32, %arg1: i32, %arg2: memref<3xi32, #tpu.memory_space<smem>>, %arg3: memref<3xi32, #tpu.memory_space<smem>>) -> (i32, i32) {
    %c0_i32 = arith.constant 0 : i32
    %c0_i32_0 = arith.constant 0 : i32
    %c0_i32_1 = arith.constant 0 : i32
    return %c0_i32, %c0_i32_0 : i32, i32
  }
  func.func @transform_4(%arg0: i32, %arg1: i32, %arg2: memref<3xi32, #tpu.memory_space<smem>>, %arg3: memref<3xi32, #tpu.memory_space<smem>>) -> (i32, i32) {
    %c0_i32 = arith.constant 0 : i32
    %c0_i32_0 = arith.constant 0 : i32
    %c0_i32_1 = arith.constant 0 : i32
    return %c0_i32, %c0_i32_0 : i32, i32
  }
  func.func @transform_5(%arg0: i32, %arg1: i32, %arg2: memref<3xi32, #tpu.memory_space<smem>>, %arg3: memref<3xi32, #tpu.memory_space<smem>>) -> (i32, i32) {
    %c0_i32 = arith.constant 0 : i32
    %c0_i32_0 = arith.constant 0 : i32
    %c0_i32_1 = arith.constant 0 : i32
    return %c0_i32, %c0_i32_0 : i32, i32
  }
  func.func @transform_6(%arg0: i32, %arg1: i32, %arg2: memref<3xi32, #tpu.memory_space<smem>>, %arg3: memref<3xi32, #tpu.memory_space<smem>>) -> (i32, i32) {
    %c0_i32 = arith.constant 0 : i32
    %c0_i32_0 = arith.constant 0 : i32
    %c0_i32_1 = arith.constant 0 : i32
    return %c0_i32, %c0_i32_0 : i32, i32
  }
  func.func @transform_7(%arg0: i32, %arg1: i32, %arg2: memref<3xi32, #tpu.memory_space<smem>>, %arg3: memref<3xi32, #tpu.memory_space<smem>>) -> (i32, i32) {
    %c0_i32 = arith.constant 0 : i32
    %c0_i32_0 = arith.constant 0 : i32
    %c0_i32_1 = arith.constant 0 : i32
    return %c0_i32, %c0_i32_0 : i32, i32
  }
  func.func @transform_8(%arg0: i32, %arg1: i32, %arg2: memref<3xi32, #tpu.memory_space<smem>>, %arg3: memref<3xi32, #tpu.memory_space<smem>>) -> (i32, i32) {
    %c0_i32 = arith.constant 0 : i32
    %c0_i32_0 = arith.constant 0 : i32
    %c0_i32_1 = arith.constant 0 : i32
    return %c0_i32, %c0_i32_0 : i32, i32
  }
  func.func @transform_9(%arg0: i32, %arg1: i32, %arg2: memref<3xi32, #tpu.memory_space<smem>>, %arg3: memref<3xi32, #tpu.memory_space<smem>>) -> (i32, i32) {
    %0 = arith.index_cast %arg1 : i32 to index
    %1 = memref.load %arg2[%0] : memref<3xi32, #tpu.memory_space<smem>>
    %c0_i32 = arith.constant 0 : i32
    %2 = arith.cmpi eq, %1, %c0_i32 : i32
    %3 = arith.index_cast %arg1 : i32 to index
    %4 = memref.load %arg3[%3] : memref<3xi32, #tpu.memory_space<smem>>
    %c0_i32_0 = arith.constant 0 : i32
    %5 = arith.cmpi slt, %1, %c0_i32_0 : i32
    %c0_i32_1 = arith.constant 0 : i32
    %c0_i32_2 = arith.constant 0 : i32
    %6 = arith.select %5, %c0_i32_1, %c0_i32_2 : i32
    %7 = arith.select %2, %4, %6 : i32
    %c0_i32_3 = arith.constant 0 : i32
    %c0_i32_4 = arith.constant 0 : i32
    return %c0_i32_3, %7 : i32, i32
  }
  func.func @transform_10(%arg0: i32, %arg1: i32, %arg2: memref<3xi32, #tpu.memory_space<smem>>, %arg3: memref<3xi32, #tpu.memory_space<smem>>) -> (i32, i32) {
    %0 = arith.index_cast %arg1 : i32 to index
    %1 = memref.load %arg2[%0] : memref<3xi32, #tpu.memory_space<smem>>
    %c1_i32 = arith.constant 1 : i32
    %2 = arith.cmpi eq, %1, %c1_i32 : i32
    %3 = arith.index_cast %arg1 : i32 to index
    %4 = memref.load %arg3[%3] : memref<3xi32, #tpu.memory_space<smem>>
    %c1_i32_0 = arith.constant 1 : i32
    %5 = arith.cmpi slt, %1, %c1_i32_0 : i32
    %c0_i32 = arith.constant 0 : i32
    %c0_i32_1 = arith.constant 0 : i32
    %6 = arith.select %5, %c0_i32, %c0_i32_1 : i32
    %7 = arith.select %2, %4, %6 : i32
    %c0_i32_2 = arith.constant 0 : i32
    %c0_i32_3 = arith.constant 0 : i32
    return %c0_i32_2, %7 : i32, i32
  }
  func.func @transform_11(%arg0: i32, %arg1: i32, %arg2: memref<3xi32, #tpu.memory_space<smem>>, %arg3: memref<3xi32, #tpu.memory_space<smem>>) -> (i32, i32) {
    %0 = arith.index_cast %arg1 : i32 to index
    %1 = memref.load %arg2[%0] : memref<3xi32, #tpu.memory_space<smem>>
    %c2_i32 = arith.constant 2 : i32
    %2 = arith.cmpi eq, %1, %c2_i32 : i32
    %3 = arith.index_cast %arg1 : i32 to index
    %4 = memref.load %arg3[%3] : memref<3xi32, #tpu.memory_space<smem>>
    %c2_i32_0 = arith.constant 2 : i32
    %5 = arith.cmpi slt, %1, %c2_i32_0 : i32
    %c0_i32 = arith.constant 0 : i32
    %c0_i32_1 = arith.constant 0 : i32
    %6 = arith.select %5, %c0_i32, %c0_i32_1 : i32
    %7 = arith.select %2, %4, %6 : i32
    %c0_i32_2 = arith.constant 0 : i32
    %c0_i32_3 = arith.constant 0 : i32
    return %c0_i32_2, %7 : i32, i32
  }
  func.func @transform_12(%arg0: i32, %arg1: i32, %arg2: memref<3xi32, #tpu.memory_space<smem>>, %arg3: memref<3xi32, #tpu.memory_space<smem>>) -> (i32, i32, i32, i32) {
    %0 = arith.index_cast %arg1 : i32 to index
    %1 = memref.load %arg2[%0] : memref<3xi32, #tpu.memory_space<smem>>
    %c0_i32 = arith.constant 0 : i32
    %2 = arith.cmpi eq, %1, %c0_i32 : i32
    %3 = arith.index_cast %arg1 : i32 to index
    %4 = memref.load %arg3[%3] : memref<3xi32, #tpu.memory_space<smem>>
    %c0_i32_0 = arith.constant 0 : i32
    %5 = arith.cmpi slt, %1, %c0_i32_0 : i32
    %c0_i32_1 = arith.constant 0 : i32
    %c0_i32_2 = arith.constant 0 : i32
    %6 = arith.select %5, %c0_i32_1, %c0_i32_2 : i32
    %7 = arith.select %2, %4, %6 : i32
    %c0_i32_3 = arith.constant 0 : i32
    %c0_i32_4 = arith.constant 0 : i32
    %c0_i32_5 = arith.constant 0 : i32
    return %arg0, %c0_i32_3, %7, %c0_i32_4 : i32, i32, i32, i32
  }
  func.func @transform_13(%arg0: i32, %arg1: i32, %arg2: memref<3xi32, #tpu.memory_space<smem>>, %arg3: memref<3xi32, #tpu.memory_space<smem>>) -> (i32, i32, i32, i32) {
    %0 = arith.index_cast %arg1 : i32 to index
    %1 = memref.load %arg2[%0] : memref<3xi32, #tpu.memory_space<smem>>
    %c1_i32 = arith.constant 1 : i32
    %2 = arith.cmpi eq, %1, %c1_i32 : i32
    %3 = arith.index_cast %arg1 : i32 to index
    %4 = memref.load %arg3[%3] : memref<3xi32, #tpu.memory_space<smem>>
    %c1_i32_0 = arith.constant 1 : i32
    %5 = arith.cmpi slt, %1, %c1_i32_0 : i32
    %c0_i32 = arith.constant 0 : i32
    %c0_i32_1 = arith.constant 0 : i32
    %6 = arith.select %5, %c0_i32, %c0_i32_1 : i32
    %7 = arith.select %2, %4, %6 : i32
    %c0_i32_2 = arith.constant 0 : i32
    %c0_i32_3 = arith.constant 0 : i32
    %c0_i32_4 = arith.constant 0 : i32
    return %arg0, %c0_i32_2, %7, %c0_i32_3 : i32, i32, i32, i32
  }
  func.func @transform_14(%arg0: i32, %arg1: i32, %arg2: memref<3xi32, #tpu.memory_space<smem>>, %arg3: memref<3xi32, #tpu.memory_space<smem>>) -> (i32, i32, i32, i32) {
    %0 = arith.index_cast %arg1 : i32 to index
    %1 = memref.load %arg2[%0] : memref<3xi32, #tpu.memory_space<smem>>
    %c2_i32 = arith.constant 2 : i32
    %2 = arith.cmpi eq, %1, %c2_i32 : i32
    %3 = arith.index_cast %arg1 : i32 to index
    %4 = memref.load %arg3[%3] : memref<3xi32, #tpu.memory_space<smem>>
    %c2_i32_0 = arith.constant 2 : i32
    %5 = arith.cmpi slt, %1, %c2_i32_0 : i32
    %c0_i32 = arith.constant 0 : i32
    %c0_i32_1 = arith.constant 0 : i32
    %6 = arith.select %5, %c0_i32, %c0_i32_1 : i32
    %7 = arith.select %2, %4, %6 : i32
    %c0_i32_2 = arith.constant 0 : i32
    %c0_i32_3 = arith.constant 0 : i32
    %c0_i32_4 = arith.constant 0 : i32
    return %arg0, %c0_i32_2, %7, %c0_i32_3 : i32, i32, i32, i32
  }
  func.func @transform_15(%arg0: i32, %arg1: i32, %arg2: memref<3xi32, #tpu.memory_space<smem>>, %arg3: memref<3xi32, #tpu.memory_space<smem>>) -> (i32, i32, i32, i32) {
    %0 = arith.index_cast %arg1 : i32 to index
    %1 = memref.load %arg2[%0] : memref<3xi32, #tpu.memory_space<smem>>
    %c0_i32 = arith.constant 0 : i32
    %2 = arith.cmpi eq, %1, %c0_i32 : i32
    %3 = arith.index_cast %arg1 : i32 to index
    %4 = memref.load %arg3[%3] : memref<3xi32, #tpu.memory_space<smem>>
    %c0_i32_0 = arith.constant 0 : i32
    %5 = arith.cmpi slt, %1, %c0_i32_0 : i32
    %c0_i32_1 = arith.constant 0 : i32
    %c0_i32_2 = arith.constant 0 : i32
    %6 = arith.select %5, %c0_i32_1, %c0_i32_2 : i32
    %7 = arith.select %2, %4, %6 : i32
    %c0_i32_3 = arith.constant 0 : i32
    %c0_i32_4 = arith.constant 0 : i32
    %c0_i32_5 = arith.constant 0 : i32
    return %arg0, %c0_i32_3, %7, %c0_i32_4 : i32, i32, i32, i32
  }
  func.func @transform_16(%arg0: i32, %arg1: i32, %arg2: memref<3xi32, #tpu.memory_space<smem>>, %arg3: memref<3xi32, #tpu.memory_space<smem>>) -> (i32, i32, i32, i32) {
    %0 = arith.index_cast %arg1 : i32 to index
    %1 = memref.load %arg2[%0] : memref<3xi32, #tpu.memory_space<smem>>
    %c1_i32 = arith.constant 1 : i32
    %2 = arith.cmpi eq, %1, %c1_i32 : i32
    %3 = arith.index_cast %arg1 : i32 to index
    %4 = memref.load %arg3[%3] : memref<3xi32, #tpu.memory_space<smem>>
    %c1_i32_0 = arith.constant 1 : i32
    %5 = arith.cmpi slt, %1, %c1_i32_0 : i32
    %c0_i32 = arith.constant 0 : i32
    %c0_i32_1 = arith.constant 0 : i32
    %6 = arith.select %5, %c0_i32, %c0_i32_1 : i32
    %7 = arith.select %2, %4, %6 : i32
    %c0_i32_2 = arith.constant 0 : i32
    %c0_i32_3 = arith.constant 0 : i32
    %c0_i32_4 = arith.constant 0 : i32
    return %arg0, %c0_i32_2, %7, %c0_i32_3 : i32, i32, i32, i32
  }
  func.func @transform_17(%arg0: i32, %arg1: i32, %arg2: memref<3xi32, #tpu.memory_space<smem>>, %arg3: memref<3xi32, #tpu.memory_space<smem>>) -> (i32, i32, i32, i32) {
    %0 = arith.index_cast %arg1 : i32 to index
    %1 = memref.load %arg2[%0] : memref<3xi32, #tpu.memory_space<smem>>
    %c2_i32 = arith.constant 2 : i32
    %2 = arith.cmpi eq, %1, %c2_i32 : i32
    %3 = arith.index_cast %arg1 : i32 to index
    %4 = memref.load %arg3[%3] : memref<3xi32, #tpu.memory_space<smem>>
    %c2_i32_0 = arith.constant 2 : i32
    %5 = arith.cmpi slt, %1, %c2_i32_0 : i32
    %c0_i32 = arith.constant 0 : i32
    %c0_i32_1 = arith.constant 0 : i32
    %6 = arith.select %5, %c0_i32, %c0_i32_1 : i32
    %7 = arith.select %2, %4, %6 : i32
    %c0_i32_2 = arith.constant 0 : i32
    %c0_i32_3 = arith.constant 0 : i32
    %c0_i32_4 = arith.constant 0 : i32
    return %arg0, %c0_i32_2, %7, %c0_i32_3 : i32, i32, i32, i32
  }
}

</mosaic_0001>

<bundles_post_ra>
// kernel: tpu_custom_call.1
= control target key start
LH: loop header
LB: loop body
LE: loop exit
PB: predicated region body
PF: predicated region fallthrough
CT: control target
= control target key end

     0   :  { %s4713_s0 = inlined_call_operand.vmem [shape: s32[3], index: 0, kind: input, shape index: {}]   ;;  %s4714_s2 = inlined_call_operand.vmem [shape: bf16[2,8,256], index: 2, kind: input, shape index: {}]   ;;  %s4715_s3 = inlined_call_operand.vmem [shape: bf16[2,16,64], index: 3, kind: input, shape index: {}]   ;;  %s4716_s4 = inlined_call_operand.vmem [shape: bf16[2,32,16], index: 4, kind: input, shape index: {}]   ;;  %s4717_s5 = inlined_call_operand.vmem [shape: bf16[24,8], index: 5, kind: input, shape index: {}]   ;;  %s4718_s6 = inlined_call_operand.vmem [shape: bf16[24,16], index: 6, kind: input, shape index: {}]   ;;  %s4719_s7 = inlined_call_operand.vmem [shape: bf16[24,32], index: 7, kind: input, shape index: {}]   ;;  %s4720_s8 = inlined_call_operand.vmem [shape: f32[24,8], index: 8, kind: input, shape index: {}]   ;;  %s4721_s9 = inlined_call_operand.vmem [shape: f32[24,8], index: 9, kind: input, shape index: {}]   ;;  %s4722_s10 = inlined_call_operand.vmem [shape: f32[24,8], index: 10, kind: input, shape index: {}]   ;;  %s4723_s11 = inlined_call_operand.vmem [shape: f32[2,256], index: 11, kind: input, shape index: {}]   ;;  %s4724_s12 = inlined_call_operand.vmem [shape: f32[2,64], index: 12, kind: input, shape index: {}]   ;;  %s4725_s13 = inlined_call_operand.vmem [shape: f32[2,16], index: 13, kind: input, shape index: {}]   ;;  %s4726_s14 = inlined_call_operand.vmem [shape: f32[2,3,256,8], index: 14, kind: output, shape index: {0}]   ;;  %s4727_s15 = inlined_call_operand.vmem [shape: f32[2,3,64,8], index: 15, kind: output, shape index: {1}]   ;;  %s4728_s16 = inlined_call_operand.vmem [shape: f32[2,3,16,8], index: 16, kind: output, shape index: {2}]   ;;  %s4729_s17 = inlined_call_operand.vmem [shape: f32[2,3,256,8], index: 17, kind: output, shape index: {3}]   ;;  %s4730_s18 = inlined_call_operand.vmem [shape: f32[2,3,64,8], index: 18, kind: output, shape index: {4}]   ;;  %s4731_s19 = inlined_call_operand.vmem [shape: f32[2,3,16,8], index: 19, kind: output, shape index: {5}]   ;;  %s4732_s1 = inlined_call_operand.vmem [shape: s32[3], index: 1, kind: input, shape index: {}]  }
   0x1   :  { %4744 = sst [smem:[#allocation12_spill]] %s4713_s0  ;;  %s29_s22 = sshll.u32 %s4732_s1, 4  ;;  %s30_s22 = int_to_ptr.vmem [resolvable:$true] %s29_s22 }
   0x2   :  { %4745 = sst [smem:[#allocation13_spill]] %s4714_s2 }
   0x3   :  { %4746 = sst [smem:[#allocation14_spill]] %s4715_s3 }
   0x4   :  { %4747 = sst [smem:[#allocation15_spill]] %s4716_s4 }
   0x5   :  { %4748 = sst [smem:[#allocation16_spill]] %s4717_s5 }
   0x6   :  { %4749 = sst [smem:[#allocation17_spill]] %s4718_s6 }
   0x7   :  { %4750 = sst [smem:[#allocation18_spill]] %s4719_s7 }
   0x8   :  { %4751 = sst [smem:[#allocation19_spill]] %s4720_s8 }
   0x9   :  { %4752 = sst [smem:[#allocation20_spill]] %s4721_s9 }
   0xa   :  { %4753 = sst [smem:[#allocation21_spill]] %s4722_s10 }
   0xb   :  { %4754 = sst [smem:[#allocation22_spill]] %s4723_s11 }
   0xc   :  { %4755 = sst [smem:[#allocation23_spill]] %s4724_s12 }
   0xd   :  { %4756 = sst [smem:[#allocation24_spill]] %s4725_s13 }
   0xe   :  { %4757 = sst [smem:[#allocation25_spill]] %s4726_s14 }
   0xf   :  { %4758 = sst [smem:[#allocation26_spill]] %s4731_s19 }
  0x10   :  { %s4759_s20 = sld [smem:[#allocation12_spill]] }
  0x16   :  { %s25_s10 = sshll.u32 %s4759_s20, 4  ;;  %s26_s10 = int_to_ptr.vmem [resolvable:$true] %s25_s10 }
  0x17   :  { %s3714_s3 = scalar_lea.vmem %s26_s10, 16  ;;  %p3719_p1 = scmp.lt.s32.totalorder %s26_s10, %s26_s10 }
  0x18   :  { %p3715_p0 = scmp.ne.s32.totalorder %s26_s10, %s3714_s3  ;;  %p3720_p2 = scmp.lt.s32.totalorder %s3714_s3, %s3714_s3 }
  0x1a   :  { %p3721_p3 = por %p3720_p2, %p3719_p1 }
  0x1c   :  { %p3722_p4 = pnand %p3721_p3, %p3715_p0 }
  0x1e   :  { %3725 = shalt.err (!%p3722_p4)  }
  0x1f   :  { %s3780_s23 = smov [#allocation3]   ;;  %s3726_s24 = scalar_lea.vmem %s30_s22, 16 }
  0x20   :  { %28 = dma.vmem_to_smem %s26_s10, 16, %s3780_s23, [#allocation2] }
  0x21   :  { %p3727_p5 = scmp.ne.s32.totalorder %s30_s22, %s3726_s24  ;;  %p3731_p6 = scmp.lt.s32.totalorder %s30_s22, %s30_s22 }
  0x22   :  { %p3732_p7 = scmp.lt.s32.totalorder %s3726_s24, %s3726_s24 }
  0x24   :  { %p3733_p8 = por %p3732_p7, %p3731_p6 }
  0x26   :  { %p3734_p9 = pnand %p3733_p8, %p3727_p5 }
  0x28   :  { %3737 = shalt.err (!%p3734_p9)  }
  0x29   :  { %s3781_s25 = smov [#allocation4]  }
  0x2a   :  { %32 = dma.vmem_to_smem %s30_s22, 16, %s3781_s25, [#allocation2] }
  0x2b   :  { %3758 = dma.done.wait [#allocation2], 32 }
  0x2c   :  { %3759 = vsyncadd [#allocation2], 4294967264 }
  0x2d   :  { %34 = sfence }
  0x2e   :  { %s3903_s1 = smov 0   ;;  %s3905_s4 = smov 0  }
  0x2f   :  { %s3907_s26 = smov 0   ;;  %s3909_s27 = smov 0  }
  0x30   :  { %s3911_s10 = smov 0  }
  0x31 LB: > { %4760 = sst [smem:[#allocation6_spill]] %s3770_s26  ;;  %s49_s28 = sadd.s32 1, %s3770_s26  ;;  %s3778_s10 = sphi %s3911_s10, %s40_s10   ;;  %s3774_s27 = sphi %s3909_s27, %s4794_s27   ;;  %s3770_s26 = sphi %s3907_s26, %s4793_s26   ;;  %s3766_s4 = sphi %s3905_s4, %s4792_s4   ;;  %s3762_s1 = sphi %s3903_s1, %s4791_s1  }
  0x32   : > { %4761 = sst [smem:[#allocation7_spill]] %s3774_s27  ;;  %s52_s29 = sadd.s32 1, %s3774_s27 }
  0x33   : > { %4762 = sst [smem:[#allocation8_spill]] %s3778_s10  ;;  %p50_p10 = scmp.ge.s32.totalorder %s49_s28, 3 }
  0x34   : > { %p3307_p11 = scmp.ge.s32.totalorder %s3778_s10, 1  ;;  %p744_p12 = scmp.lt.s32.totalorder %s3778_s10, 7 }
  0x35   : > { %s4796_s28 = smov (%p50_p10, %s49_s28), 0  ;;  %s4798_s29 = smov (!%p50_p10, %s52_s29), %s3774_s27 }
  0x36   : > { %4763 = sst [smem:[#allocation9_spill]] %s4796_s28  ;;  %p745_p13 = pnand %p3307_p11, %p744_p12 }
  0x37   : > { %p54_p0 = scmp.ge.s32.totalorder %s4798_s29, 2 }
  0x38   : > { %748 = sbr.rel (%p745_p13) target bundleno = 1688 (0x698), region = 68 }
  0x39   : > { %s4800_s29 = smov (%p54_p0, %s4798_s29), 0 }
  0x3a   : > { %4764 = sst [smem:[#allocation10_spill]] %s4800_s29 }
  0x3d   : > { %s926_s0 = sld [smem:[#allocation3 + %s3762_s1]]  ;;  %p931_p1 = scmp.lt.s32.totalorder %s3766_s4, 1 }
  0x3e   : > { %s928_s30 = sld [smem:[#allocation4 + %s3762_s1]] }
  0x3f   : > { %s4802_s4 = smov (!%p931_p1, %s3766_s4), 1  ;;  %s944_s20 = sld [smem:[#allocation3 + %s3762_s1]] }
  0x40   : > { %s3309_s21 = sshll.u32 %s4802_s4, 1  ;;  %s946_s2 = sld [smem:[#allocation4 + %s3762_s1]] }
  0x41   : > { %s960_s22 = sld [smem:[#allocation3 + %s3762_s1]]  ;;  %s4768_s26 = sshll.u32 %s4802_s4, 2 }
  0x42   : > { %s962_s23 = sld [smem:[#allocation4 + %s3762_s1]] }
  0x43   : > { %p927_p2 = scmp.eq.s32.totalorder %s926_s0, 0  ;;  %s976_s24 = sld [smem:[#allocation3 + %s3762_s1]] }
  0x44   : > { %s978_s29 = sld [smem:[#allocation4 + %s3762_s1]] }
  0x45   : > { %s4804_s30 = smov (!%p927_p2, %s928_s30), 0  ;;  %p945_p3 = scmp.eq.s32.totalorder %s944_s20, 1 }
  0x46   : > { %s3308_s28 = sshll.u32 %s4804_s30, 1  ;;  %s3949_s27 = sld [smem:[#allocation3 + %s3762_s1]] }
  0x47   : > { %p933_p4 = scmp.lt.s32.totalorder %s3308_s28, 1  ;;  %p961_p5 = scmp.eq.s32.totalorder %s960_s22, 2 }
  0x48   : > { %s4806_s2 = smov (!%p945_p3, %s946_s2), 0  ;;  %s992_s3 = sld [smem:[#allocation4 + %s3762_s1]] }
  0x49   : > { %s4808_s28 = smov (!%p933_p4, %s3308_s28), 1  ;;  %p950_p6 = scmp.lt.s32.totalorder %s4806_s2, 0 }
  0x4a   : > { %p977_p7 = scmp.eq.s32.totalorder %s976_s24, 0  ;;  %s936_s0 = sadd.s32 %s3309_s21, %s4808_s28 }
  0x4b   : > { %s3310_s25 = sshll.u32 %s936_s0, 2  ;;  %s4765_s10 = sld [smem:[#allocation13_spill]] }
  0x4c   : > { %p991_p8 = scmp.eq.s32.totalorder %s3949_s27, 1  ;;  %s1002_s7 = sld [smem:[#allocation3 + %s3762_s1]] }
  0x4d   : > { %s4810_s2 = smov (!%p950_p6, %s4806_s2), 0  ;;  %s4812_s23 = smov (!%p961_p5, %s962_s23), 0 }
  0x4e   : > { %s953_s22 = sadd.s32 %s3309_s21, %s4810_s2  ;;  %s1004_s9 = sld [smem:[#allocation4 + %s3762_s1]] }
  0x4f   : > { %s3312_s6 = sshll.u32 %s953_s22, 2  ;;  %p966_p9 = scmp.lt.s32.totalorder %s4812_s23, 0 }
  0x50   : > { %s4767_s28 = sld [smem:[#allocation14_spill]]  ;;  %s4816_s29 = smov (!%p977_p7, %s978_s29), 0 }
  0x51   : > { %s3956_s30 = scalar_lea.vmem %s4765_s10, %s3310_s25  ;;  %s1014_s0 = sld [smem:[#allocation3 + %s3762_s1]] }
  0x52   : > { %4766 = sst [smem:[#allocation11_spill]] %s3956_s30  ;;  %s4814_s23 = smov (!%p966_p9, %s4812_s23), 0 }
  0x53   : > { %s969_s10 = sadd.s32 %s4768_s26, %s4814_s23  ;;  %p1003_p10 = scmp.eq.s32.totalorder %s1002_s7, 2 }
  0x54   : > { %s3314_s25 = sshll.u32 %s969_s10, 2  ;;  %s3315_s21 = sshll.u32 %s4816_s29, 1 }
  0x55   : > { %s4769_s22 = sld [smem:[#allocation15_spill]]  ;;  %p981_p11 = scmp.lt.s32.totalorder %s3315_s21, 1 }
  0x56   : > { %s3963_s19 = scalar_lea.vmem %s4767_s28, %s3312_s6  ;;  %s4818_s3 = smov (!%p991_p8, %s992_s3), 0 }
  0x57   : > { %s4820_s21 = smov (!%p981_p11, %s3315_s21), 1  ;;  %p994_p12 = scmp.lt.s32.totalorder %s4818_s3, 0 }
  0x58   : > { %p1015_p13 = scmp.eq.s32.totalorder %s1014_s0, 0  ;;  %s3316_s5 = sshll.u32 %s4820_s21, 1 }
  0x59   : > { %s1016_s6 = sld [smem:[#allocation4 + %s3762_s1]]  ;;  %s4822_s3 = smov (!%p994_p12, %s4818_s3), 0 }
  0x5a   : > { %s4770_s11 = sld [smem:[#allocation22_spill]]  ;;  %s4824_s9 = smov (!%p1003_p10, %s1004_s9), 0 }
  0x5b   : > { %s3972_s30 = scalar_lea.vmem %s4769_s22, %s3314_s25  ;;  %s1032_s29 = sld [smem:[#allocation3 + %s3762_s1]] }
  0x5c   : > { %s3317_s28 = sshll.u32 %s4822_s3, 1  ;;  %s1034_s27 = sld [smem:[#allocation4 + %s3762_s1]] }
  0x5d   : > { %s4771_s12 = sld [smem:[#allocation23_spill]]  ;;  %p1006_p0 = scmp.lt.s32.totalorder %s4824_s9, 0 }
  0x5e   : > { %s4772_s13 = sld [smem:[#allocation24_spill]]  ;;  %s4742_s20 = smul.u32 24, %s4802_s4 }
  0x5f   : > { %s4826_s6 = smov (!%p1015_p13, %s1016_s6), 0  ;;  %s4828_s9 = smov (!%p1006_p0, %s4824_s9), 0 }
  0x60   : > { %s3980_s23 = scalar_lea.vmem %s4770_s11, %s3316_s5  ;;  %s3319_s25 = sshll.u32 %s4826_s6, 5 }
  0x61   : > { %p1033_p1 = scmp.eq.s32.totalorder %s1032_s29, 1  ;;  %s3318_s21 = sshll.u32 %s4828_s9, 1 }
  0x62   : > { %p1021_p2 = scmp.lt.s32.totalorder %s3319_s25, 31  ;;  %s4773_s22 = smul.u32 96, %s4802_s4 }
  0x63   : > { %s3988_s0 = scalar_lea.vmem %s4771_s12, %s3317_s28  ;;  %s4832_s27 = smov (!%p1033_p1, %s1034_s27), 0 }
  0x64   : > { %s3993_s3 = scalar_lea.vmem %s4772_s13, %s3318_s21  ;;  %s4830_s25 = smov (!%p1021_p2, %s3319_s25), 31 }
  0x65   : > { %s1024_s5 = sadd.s32 %s4773_s22, %s4830_s25  ;;  %s1050_s8 = sld [smem:[#allocation3 + %s3762_s1]] }
  0x66   : > { %s3320_s6 = sshll.u32 %s1024_s5, 3  ;;  %s3321_s24 = sshll.u32 %s4832_s27, 3 }
  0x67   : > { %s4774_s14 = sld [smem:[#allocation25_spill]]  ;;  %p1039_p3 = scmp.lt.s32.totalorder %s3321_s24, 7 }
  0x68   : > { %s1052_s26 = sld [smem:[#allocation4 + %s3762_s1]] }
  0x69   : > { %s4834_s24 = smov (!%p1039_p3, %s3321_s24), 7  ;;  %s1068_s10 = sld [smem:[#allocation3 + %s3762_s1]] }
  0x6a   : > { %s1042_s21 = sadd.s32 %s4742_s20, %s4834_s24  ;;  %s1070_s7 = sld [smem:[#allocation4 + %s3762_s1]] }
  0x6b   : > { %p1051_p4 = scmp.eq.s32.totalorder %s1050_s8, 2  ;;  %s3322_s25 = sshll.u32 %s1042_s21, 3 }
  0x6c   : > { %s4012_s27 = scalar_lea.vmem %s4727_s15, %s3322_s25  ;;  %s1086_s5 = sld [smem:[#allocation3 + %s3762_s1]] }
  0x6d   : > { %s4002_s28 = scalar_lea.vmem %s4774_s14, %s3320_s6  ;;  %s4743_s6 = smul.u32 6, %s4802_s4 }
  0x6e   : > { %s4836_s26 = smov (!%p1051_p4, %s1052_s26), 0  ;;  %s1088_s29 = sld [smem:[#allocation4 + %s3762_s1]] }
  0x6f   : > { %s3323_s9 = sshll.u32 %s4836_s26, 1  ;;  %p1069_p5 = scmp.eq.s32.totalorder %s1068_s10, 0 }
  0x70   : > { %p1057_p6 = scmp.lt.s32.totalorder %s3323_s9, 1  ;;  %s1104_s24 = sld [smem:[#allocation3 + %s3762_s1]] }
  0x71   : > { %s4838_s7 = smov (!%p1069_p5, %s1070_s7), 0  ;;  %s1106_s2 = sld [smem:[#allocation4 + %s3762_s1]] }
  0x72   : > { %s4840_s9 = smov (!%p1057_p6, %s3323_s9), 1  ;;  %s3325_s8 = sshll.u32 %s4838_s7, 5 }
  0x73   : > { %p1087_p7 = scmp.eq.s32.totalorder %s1086_s5, 1  ;;  %s1060_s21 = sadd.s32 %s4743_s6, %s4840_s9 }
  0x74   : > { %p1075_p8 = scmp.lt.s32.totalorder %s3325_s8, 31  ;;  %s3324_s25 = sshll.u32 %s1060_s21, 3 }
  0x75   : > { %s4024_s11 = scalar_lea.vmem %s4728_s16, %s3324_s25  ;;  %s4844_s29 = smov (!%p1087_p7, %s1088_s29), 0 }
  0x76   : > { %p1105_p9 = scmp.eq.s32.totalorder %s1104_s24, 2  ;;  %s4842_s8 = smov (!%p1075_p8, %s3325_s8), 31 }
  0x77   : > { %s4775_s26 = smul.u32 96, %s4802_s4  ;;  %s4029_s12 = sld [smem:[#allocation3 + %s3762_s1]] }
  0x78   : > { %s3327_s5 = sshll.u32 %s4844_s29, 3  ;;  %s4846_s2 = smov (!%p1105_p9, %s1106_s2), 0 }
  0x79   : > { %s1078_s10 = sadd.s32 %s4775_s26, %s4842_s8  ;;  %p1093_p10 = scmp.lt.s32.totalorder %s3327_s5, 7 }
  0x7a   : > { %s3326_s7 = sshll.u32 %s1078_s10, 3  ;;  %s3329_s20 = sshll.u32 %s4846_s2, 1 }
  0x7b   : > { %s4034_s21 = scalar_lea.vmem %s4729_s17, %s3326_s7  ;;  %s4848_s5 = smov (!%p1093_p10, %s3327_s5), 7 }
  0x7c   : > { %s4776_s25 = smul.u32 24, %s4802_s4  ;;  %p1111_p11 = scmp.lt.s32.totalorder %s3329_s20, 1 }
  0x7d   : > { %s4777_s29 = smul.u32 6, %s4802_s4  ;;  %s4778_s7 = sld [smem:[#allocation26_spill]] }
  0x7e   : > { %s1096_s24 = sadd.s32 %s4776_s25, %s4848_s5  ;;  %s4850_s20 = smov (!%p1111_p11, %s3329_s20), 1 }
  0x7f   : > { %s3328_s22 = sshll.u32 %s1096_s24, 3  ;;  %s1114_s8 = sadd.s32 %s4777_s29, %s4850_s20 }
  0x80   : > { %s4041_s1 = scalar_lea.vmem %s4730_s18, %s3328_s22  ;;  %s3330_s26 = sshll.u32 %s1114_s8, 3 }
  0x81   : > { %p3331_p12 = scmp.ne.s32.totalorder %s4029_s12, 0 }
  0x82   : > { %s4779_s2 = sld [smem:[#allocation11_spill]] (!%p3331_p12) }
  0x83   : > { %s4048_s9 = scalar_lea.vmem %s4778_s7, %s3330_s26  ;;  %1127 = sbr.rel (%p3331_p12) target bundleno = 846 (0x34e), region = 72 }
  0x84   : > { %s4780_s4 = sld [smem:[#allocation19_spill]] (!%p3331_p12) }
  0x85   : > { %s4782_s29 = sld [smem:[#allocation16_spill]] (!%p3331_p12) }
  0x88   : > { %v1131_v0 = vld [vmem:[%s4779_s2] sm:$0xff]  ;;  %vm1170_vm0 = vcmask 1043456   ;;  %v3782_v3 = vmov 0   ;;  %vm1163_vm1 = vcmask 64512   ;;  %v3783_v10 = vmov 1  }
  0x89   : > { %v3335_v1 = vcombine.high %v1131_v0, %v1131_v0  ;;  %v3334_v2 = vcombine.low %v1131_v0, %v1131_v0  ;;  %1209 = vmatprep.mubr.bf16.mxu0 %v3782_v3  ;;  %1219 = vmatprep.mubr.bf16.mxu1 %v3782_v3  ;;  %v3784_v11 = vmov 2   ;;  %v3785_v12 = vmov 3   ;;  %v1312_v23 = vld [vmem:[%s3980_s23] ss:$2 sm:$0x3] }
  0x8a   : > { %3625 = vset.pattern.permute.xlu0 %v3782_v3  ;;  %s4781_s5 = smov %s4780_s4  ;;  %v1132_v4 = vld [vmem:[%s4780_s4] sm:$0xff]  ;;  %3626 = vset.pattern.permute.xlu1 %v3782_v3  ;;  %v3786_v13 = vmov 4   ;;  %v1326_v18 = vlaneseq }
  0x8b   : > { %v1134_v5 = vld [vmem:[%s4781_s5 + $0x10] sm:$0xff]  ;;  %3336 = vmatprep.subr.msk.bf16.mxu0 %vm1170_vm0, %v3335_v1  ;;  %v1172_v6 = vsel %vm1170_vm0, %v3334_v2, 0  ;;  %v3637_v7 = vld [vmem:[%s4782_s29] sm:$0xff]   ;;  %3560 = vmatprep.subr.msk.bf16.mxu1 %vm1170_vm0, %v3335_v1  ;;  %v3638_v8 = vld [vmem:[%s4782_s29 + $0x8] ss:$0 sps:$4 sm:$0xff]  }
  0x8c   : > { %1192 = vmatpush1.bf16.msra.mxu0 %v1172_v6  ;;  %3561 = vmatpush1.bf16.msra.mxu1 %v1172_v6  ;;  %v1133_v9 = vld [vmem:[%s4781_s5 + $0x8] sm:$0xff]  ;;  %v4075_v20 = vshrl.u32 %v1326_v18, 7  ;;  %v3345_v61 = vld [vmem:[%s3980_s23 + $0x1] ss:$2 sm:$0x3] }
  0x8d   : > { %1137 = vperm.xlu0 %3625, %v1132_v4   ;;  %1147 = vperm.xlu1 %3626, %v1134_v5  }
  0x8e   : > { %v1328_v21 = vsub.s32 0, %v4075_v20  ;;  %v1332_v22 = vsub.s32 1, %v4075_v20 }
  0x8f   : > { %3337 = vmatmul.mubr.msk.bf16.vlgmr.msra.gmra.mxu0 %vm1163_vm1, %v3637_v7  ;;  %3338 = vmatmul.mubr.msk.bf16.vlgmr.msra.gmra.mxu1 %vm1163_vm1, %v3638_v8 }
  0x90   : > { %v4082_v25 = vrot.slane %v1312_v23, %v1328_v21  ;;  %v4086_v26 = vrot.slane %v1312_v23, %v1332_v22  ;;  %v4108_v6 = vrot.slane %v3345_v61, %v1328_v21 }
  0x91   : > { %1142 = vperm.xlu0 %3625, %v1133_v9   ;;  %3627 = vset.pattern.permute.xlu1 %v3783_v10 }
  0x92   : > { %1265 = vperm.xlu1 %3627, %v1132_v4  }
  0x95   : > { %3628 = vset.pattern.permute.xlu0 %v3783_v10 }
  0x96   : > { %1273 = vperm.xlu1 %3627, %v1134_v5   ;;  %1269 = vperm.xlu0 %3628, %v1133_v9  }
  0x9a   : > { %3629 = vset.pattern.permute.xlu1 %v3784_v11  ;;  %3630 = vset.pattern.permute.xlu0 %v3784_v11 }
  0x9b   : > { %1289 = vperm.xlu1 %3629, %v1132_v4   ;;  %1293 = vperm.xlu0 %3630, %v1133_v9  }
  0x9f   : > { %1297 = vperm.xlu1 %3629, %v1134_v5   ;;  %3632 = vset.pattern.permute.xlu0 %v3785_v12 }
  0xa0   : > { %1318 = vperm.xlu0 %3632, %v1133_v9  }
  0xa3   : > { %3631 = vset.pattern.permute.xlu1 %v3785_v12  ;;  %v4113_v12 = vrot.slane %v3345_v61, %v1332_v22 }
  0xa4   : > { %1314 = vperm.xlu1 %3631, %v1132_v4   ;;  %3634 = vset.pattern.permute.xlu0 %v3786_v13 }
  0xa5   : > { %1355 = vperm.xlu0 %3634, %v1133_v9  }
  0xa8   : > { %1322 = vperm.xlu1 %3631, %v1134_v5  }
  0xac   : > { %3633 = vset.pattern.permute.xlu1 %v3786_v13 }
  0xad   : > { %1351 = vperm.xlu1 %3633, %v1132_v4  }
  0xb1   : > { %1359 = vperm.xlu1 %3633, %v1134_v5  }
 0x108   : > { %v1148_v14 = vpop.permute.xlu1 %1147  ;;  %v1138_v30 = vpop.permute.xlu0 %1137 }
 0x10c   : > { %v1143_v37 = vpop.permute.xlu0 %1142 }
 0x10d   : > { %v4069_v15 = vpop.permute.xlu1 %1265 }
 0x111   : > { %v1274_v16 = vpop.permute.xlu1 %1273  ;;  %v1270_v60 = vpop.permute.xlu0 %1269 }
 0x116   : > { %v4071_v17 = vpop.permute.xlu1 %1289  ;;  %v1294_v18 = vpop.permute.xlu0 %1293 }
 0x11a   : > { %v4073_v19 = vpop.permute.xlu1 %1297 }
 0x11f   : > { %v4080_v24 = vpop.permute.xlu1 %1314 }
 0x123   : > { %v1323_v27 = vpop.permute.xlu1 %1322 }
 0x124   : > { %v4089_v28 = vmul.f32 %v4082_v25, %v1323_v27  ;;  %v4092_v29 = vmul.f32 %v4086_v26, %v1323_v27 }
 0x128   : > { %v1352_v58 = vpop.permute.xlu1 %1351 }
 0x12c   : > { %v1360_v1 = vpop.permute.xlu1 %1359 }
 0x12d   : > { %v1377_v13 = vmul.f32 %v4108_v6, %v1360_v1 }
 0x14f   : > { %v1211_v31 = vpop.f32.mrf.mxu0  ;;  %v1221_v32 = vpop.f32.mrf.mxu1 }
 0x150   : > { %v4094_v33 = vadd.f32 %v1211_v31, %v1138_v30  ;;  %v4096_v34 = vadd.f32 %v1221_v32, %v1148_v14 }
 0x151   : > { %v1213_v35 = vpop.f32.mrf.mxu0  ;;  %v1223_v36 = vpop.f32.mrf.mxu1 }
 0x152   : > { %v4098_v38 = vadd.f32 %v1213_v35, %v1138_v30  ;;  %1385 = vxpose.xlu1.b32.start.end [1/1] (short) %v4094_v33, 128  ;;  %v3343_v39 = vmul.f32 -1.442695, %v4096_v34  ;;  %v4102_v40 = vadd.f32 %v1223_v36, %v1148_v14  ;;  %v1378_v30 = vmul.f32 %v4113_v12, %v1360_v1 }
 0x153   : > { %v1215_v41 = vpop.f32.mrf.mxu0  ;;  %v1225_v42 = vpop.f32.mrf.mxu1 }
 0x154   : > { %v1216_v43 = vadd.f32 %v1215_v41, %v1143_v37  ;;  %1417 = vxpose.xlu0.b32.start.end [1/1] (short) %v4098_v38, 128  ;;  %v3344_v44 = vmul.f32 -1.442695, %v4102_v40  ;;  %3639 = vpow2.f32 %v3343_v39  ;;  %v3340_v36 = vmul.f32 -1.442695, %v4098_v38 }
 0x155   : > { %v1217_v45 = vpop.f32.mrf.mxu0  ;;  %v1226_v46 = vpop.f32.mrf.mxu1 }
 0x156   : > { %v3341_v47 = vmul.f32 -1.442695, %v1216_v43  ;;  %v1218_v48 = vadd.f32 %v1217_v45, %v1143_v37  ;;  %3641 = vpow2.f32 %v3344_v44 }
 0x158   : > { %3643 = vpow2.f32 %v3341_v47  ;;  %v3342_v49 = vmul.f32 -1.442695, %v1218_v48 }
 0x15a   : > { %3645 = vpow2.f32 %v3342_v49  ;;  %v1337_v49 = vmul.f32 %v4086_v26, %v4080_v24 }
 0x161   : > { %v3640_v50 = vpop.eup %3639 }
 0x162   : > { %v1250_v51 = vadd.f32 1.0, %v3640_v50 }
 0x163   : > { %v3642_v52 = vpop.eup %3641 }
 0x164   : > { %3647 = vrcp.f32 %v1250_v51  ;;  %v1251_v54 = vadd.f32 1.0, %v3642_v52  ;;  %v1336_v51 = vmul.f32 %v4082_v25, %v4080_v24 }
 0x165   : > { %v3644_v53 = vpop.eup %3643 }
 0x166   : > { %v1248_v55 = vadd.f32 1.0, %v3644_v53  ;;  %3649 = vrcp.f32 %v1251_v54  ;;  %v1374_v53 = vmul.f32 %v4113_v12, %v1352_v58  ;;  %v1319_v54 = vpop.permute.xlu0 %1318 }
 0x167   : > { %v3646_v56 = vpop.eup %3645 }
 0x168   : > { %3651 = vrcp.f32 %v1248_v55  ;;  %v1249_v57 = vadd.f32 1.0, %v3646_v56 }
 0x16a   : > { %3653 = vrcp.f32 %v1249_v57  ;;  %v4139_v57 = vpop.permute.xlu0 %1355 }
 0x16b   : > { %3655 = vpow2.f32 %v3340_v36 }
 0x171   : > { %v3648_v59 = vpop.eup %3647 }
 0x172   : > { %v1280_v62 = vmul.f32 %v3648_v59, %v1274_v16  ;;  %v1286_v63 = vmul.f32 %v3648_v59, %v3648_v59 }
 0x173   : > { %v3650_v0 = vpop.eup %3649 }
 0x174   : > { %v1281_v3 = vmul.f32 %v3650_v0, %v1274_v16  ;;  %v1287_v4 = vmul.f32 %v3650_v0, %v3650_v0  ;;  %v1304_v5 = vmul.f32 %v4073_v19, %v1286_v63 }
 0x175   : > { %v3652_v2 = vpop.eup %3651 }
 0x176   : > { %v1278_v7 = vmul.f32 %v3652_v2, %v1270_v60  ;;  %v1284_v8 = vmul.f32 %v3652_v2, %v3652_v2  ;;  %v1305_v10 = vmul.f32 %v4073_v19, %v1287_v4  ;;  %v1310_v11 = vadd.f32 %v1304_v5, %v1280_v62 }
 0x177   : > { %v3654_v9 = vpop.eup %3653 }
 0x178   : > { %v1279_v14 = vmul.f32 %v3654_v9, %v1270_v60  ;;  %v1285_v16 = vmul.f32 %v3654_v9, %v3654_v9  ;;  %v1311_v23 = vadd.f32 %v1305_v10, %v1281_v3  ;;  %v1346_v27 = vadd.f32 %v4089_v28, %v1310_v11  ;;  %v3656_v37 = vpop.eup %3655 }
 0x179   : > { %v1302_v21 = vmul.f32 %v1294_v18, %v1284_v8  ;;  %v3339_v28 = vmul.f32 -1.442695, %v4094_v33  ;;  %v1247_v41 = vadd.f32 1.0, %v3656_v37  ;;  %v1376_v37 = vmul.f32 %v4113_v12, %v4139_v57 }
 0x17a   : > { %v1303_v31 = vmul.f32 %v1294_v18, %v1285_v16  ;;  %v1347_v32 = vadd.f32 %v4092_v29, %v1311_v23  ;;  %v4121_v35 = vadd.f32 %v1377_v13, %v1346_v27 }
 0x17b   : > { %v4119_v19 = vadd.f32 %v1302_v21, %v1278_v7  ;;  %3657 = vpow2.f32 %v3339_v28 }
 0x17c   : > { %v4123_v20 = vadd.f32 %v1303_v31, %v1279_v14  ;;  %v4125_v22 = vadd.f32 %v1378_v30, %v1347_v32  ;;  %3659 = vrcp.f32 %v1247_v41  ;;  %v1339_v30 = vmul.f32 %v4086_v26, %v1319_v54 }
 0x17d   : > { %v1338_v32 = vmul.f32 %v4082_v25, %v1319_v54  ;;  %v1375_v41 = vmul.f32 %v4108_v6, %v4139_v57 }
 0x17e   : > { %v1345_v28 = vadd.f32 %v1339_v30, %v4123_v20 }
 0x17f   : > { %v1344_v26 = vadd.f32 %v1338_v32, %v4119_v19 }
 0x181   : > { %v1381_v12 = vadd.f32 %v1375_v41, %v1344_v26 }
 0x188   : > { %v3658_v39 = vpop.eup %3657 }
 0x189   : > { %v1246_v29 = vadd.f32 1.0, %v3658_v39  ;;  %v3660_v42 = vpop.eup %3659 }
 0x18a   : > { %v1283_v45 = vmul.f32 %v3660_v42, %v3660_v42 }
 0x18b   : > { %3661 = vrcp.f32 %v1246_v29  ;;  %v1382_v29 = vadd.f32 %v1376_v37, %v1345_v28 }
 0x18c   : > { %v1301_v47 = vmul.f32 %v4071_v17, %v1283_v45 }
 0x18f   : > { %1609 = vxpose.xlu1.b32.start.end [1/1] (short) %v1218_v48, 128 }
 0x191   : > { %1577 = vxpose.xlu0.b32.start.end [1/1] (short) %v1216_v43, 128  ;;  %v1277_v43 = vmul.f32 %v3660_v42, %v4069_v15 }
 0x193   : > { %v1307_v48 = vadd.f32 %v1301_v47, %v1277_v43 }
 0x195   : > { %v1343_v52 = vadd.f32 %v1337_v49, %v1307_v48 }
 0x198   : > { %v3662_v44 = vpop.eup %3661 }
 0x199   : > { %v1282_v46 = vmul.f32 %v3662_v44, %v3662_v44  ;;  %v1276_v33 = vmul.f32 %v3662_v44, %v4069_v15  ;;  %v1373_v15 = vmul.f32 %v4108_v6, %v1352_v58 }
 0x19b   : > { %v1300_v38 = vmul.f32 %v4071_v17, %v1282_v46  ;;  %v1380_v17 = vadd.f32 %v1374_v53, %v1343_v52 }
 0x19d   : > { %v1306_v50 = vadd.f32 %v1300_v38, %v1276_v33 }
 0x19f   : > { %v1342_v55 = vadd.f32 %v1336_v51, %v1306_v50 }
 0x1a1   : > { %v1379_v56 = vadd.f32 %v1373_v15, %v1342_v55 }
 0x1cc   : > { %1513 = vxpose.xlu1.b32.start.end [1/1] (short) %v1380_v17, 128 }
 0x1ce   : > { %v1401_v59 = vpop.trf.xlu1  ;;  %1481 = vxpose.xlu0.b32.start.end [1/1] (short) %v1379_v56, 128 }
 0x1cf   : > { %1449 = vst.msk [vmem:[%s4002_s28] sm:$0xff] %vm1163_vm1, %v1401_v59 }
 0x1d0   : > { %v1433_v24 = vpop.trf.xlu0 }
 0x1d1   : > { %1465 = vst.msk [vmem:[%s4002_s28 + $0x80] sm:$0xff] %vm1163_vm1, %v1433_v24 }
 0x1d2   : > { %v1402_v60 = vpop.trf.xlu1 }
 0x1d3   : > { %1450 = vst.msk [vmem:[%s4002_s28 + $0x8] sm:$0xff] %vm1163_vm1, %v1402_v60 }
 0x1d4   : > { %v1434_v58 = vpop.trf.xlu0 }
 0x1d5   : > { %1466 = vst.msk [vmem:[%s4002_s28 + $0x88] sm:$0xff] %vm1163_vm1, %v1434_v58 }
 0x1d6   : > { %v1403_v61 = vpop.trf.xlu1 }
 0x1d7   : > { %1451 = vst.msk [vmem:[%s4002_s28 + $0x10] sm:$0xff] %vm1163_vm1, %v1403_v61 }
 0x1d8   : > { %v1435_v62 = vpop.trf.xlu0 }
 0x1d9   : > { %1467 = vst.msk [vmem:[%s4002_s28 + $0x90] sm:$0xff] %vm1163_vm1, %v1435_v62 }
 0x1da   : > { %v1404_v63 = vpop.trf.xlu1 }
 0x1db   : > { %1452 = vst.msk [vmem:[%s4002_s28 + $0x18] sm:$0xff] %vm1163_vm1, %v1404_v63 }
 0x1dc   : > { %v1436_v0 = vpop.trf.xlu0 }
 0x1dd   : > { %1468 = vst.msk [vmem:[%s4002_s28 + $0x98] sm:$0xff] %vm1163_vm1, %v1436_v0 }
 0x1de   : > { %v1405_v1 = vpop.trf.xlu1 }
 0x1df   : > { %1453 = vst.msk [vmem:[%s4002_s28 + $0x20] sm:$0xff] %vm1163_vm1, %v1405_v1 }
 0x1e0   : > { %v1437_v2 = vpop.trf.xlu0 }
 0x1e1   : > { %1469 = vst.msk [vmem:[%s4002_s28 + $0xa0] sm:$0xff] %vm1163_vm1, %v1437_v2 }
 0x1e2   : > { %v1406_v3 = vpop.trf.xlu1 }
 0x1e3   : > { %1454 = vst.msk [vmem:[%s4002_s28 + $0x28] sm:$0xff] %vm1163_vm1, %v1406_v3 }
 0x1e4   : > { %v1438_v4 = vpop.trf.xlu0 }
 0x1e5   : > { %1470 = vst.msk [vmem:[%s4002_s28 + $0xa8] sm:$0xff] %vm1163_vm1, %v1438_v4 }
 0x1e6   : > { %v1407_v5 = vpop.trf.xlu1 }
 0x1e7   : > { %1455 = vst.msk [vmem:[%s4002_s28 + $0x30] sm:$0xff] %vm1163_vm1, %v1407_v5 }
 0x1e8   : > { %v1439_v7 = vpop.trf.xlu0 }
 0x1e9   : > { %1471 = vst.msk [vmem:[%s4002_s28 + $0xb0] sm:$0xff] %vm1163_vm1, %v1439_v7 }
 0x1ea   : > { %v1408_v8 = vpop.trf.xlu1 }
 0x1eb   : > { %1456 = vst.msk [vmem:[%s4002_s28 + $0x38] sm:$0xff] %vm1163_vm1, %v1408_v8 }
 0x1ec   : > { %v1440_v9 = vpop.trf.xlu0 }
 0x1ed   : > { %1472 = vst.msk [vmem:[%s4002_s28 + $0xb8] sm:$0xff] %vm1163_vm1, %v1440_v9 }
 0x1ee   : > { %v1409_v10 = vpop.trf.xlu1 }
 0x1ef   : > { %1457 = vst.msk [vmem:[%s4002_s28 + $0x40] sm:$0xff] %vm1163_vm1, %v1409_v10 }
 0x1f0   : > { %v1441_v11 = vpop.trf.xlu0 }
 0x1f1   : > { %1473 = vst.msk [vmem:[%s4002_s28 + $0xc0] sm:$0xff] %vm1163_vm1, %v1441_v11 }
 0x1f2   : > { %v1410_v13 = vpop.trf.xlu1 }
 0x1f3   : > { %1458 = vst.msk [vmem:[%s4002_s28 + $0x48] sm:$0xff] %vm1163_vm1, %v1410_v13 }
 0x1f4   : > { %v1442_v14 = vpop.trf.xlu0 }
 0x1f5   : > { %1474 = vst.msk [vmem:[%s4002_s28 + $0xc8] sm:$0xff] %vm1163_vm1, %v1442_v14 }
 0x1f6   : > { %v1411_v18 = vpop.trf.xlu1 }
 0x1f7   : > { %1459 = vst.msk [vmem:[%s4002_s28 + $0x50] sm:$0xff] %vm1163_vm1, %v1411_v18 }
 0x1f8   : > { %v1443_v16 = vpop.trf.xlu0 }
 0x1f9   : > { %1475 = vst.msk [vmem:[%s4002_s28 + $0xd0] sm:$0xff] %vm1163_vm1, %v1443_v16 }
 0x1fa   : > { %v1412_v23 = vpop.trf.xlu1 }
 0x1fb   : > { %1460 = vst.msk [vmem:[%s4002_s28 + $0x58] sm:$0xff] %vm1163_vm1, %v1412_v23 }
 0x1fc   : > { %v1444_v27 = vpop.trf.xlu0 }
 0x1fd   : > { %1476 = vst.msk [vmem:[%s4002_s28 + $0xd8] sm:$0xff] %vm1163_vm1, %v1444_v27 }
 0x1fe   : > { %v1413_v21 = vpop.trf.xlu1 }
 0x1ff   : > { %1461 = vst.msk [vmem:[%s4002_s28 + $0x60] sm:$0xff] %vm1163_vm1, %v1413_v21 }
 0x200   : > { %v1445_v31 = vpop.trf.xlu0 }
 0x201   : > { %1477 = vst.msk [vmem:[%s4002_s28 + $0xe0] sm:$0xff] %vm1163_vm1, %v1445_v31 }
 0x202   : > { %v1414_v36 = vpop.trf.xlu1 }
 0x203   : > { %1462 = vst.msk [vmem:[%s4002_s28 + $0x68] sm:$0xff] %vm1163_vm1, %v1414_v36 }
 0x204   : > { %v1446_v39 = vpop.trf.xlu0 }
 0x205   : > { %1478 = vst.msk [vmem:[%s4002_s28 + $0xe8] sm:$0xff] %vm1163_vm1, %v1446_v39 }
 0x206   : > { %v1415_v25 = vpop.trf.xlu1 }
 0x207   : > { %1463 = vst.msk [vmem:[%s4002_s28 + $0x70] sm:$0xff] %vm1163_vm1, %v1415_v25 }
 0x208   : > { %v1447_v20 = vpop.trf.xlu0 }
 0x209   : > { %1479 = vst.msk [vmem:[%s4002_s28 + $0xf0] sm:$0xff] %vm1163_vm1, %v1447_v20  ;;  %1706 = vxpose.xlu1.b32.start.end [1/1] (short) %v1382_v29, 128 }
 0x20a   : > { %v1416_v19 = vpop.trf.xlu1 }
 0x20b   : > { %1464 = vst.msk [vmem:[%s4002_s28 + $0x78] sm:$0xff] %vm1163_vm1, %v1416_v19  ;;  %1674 = vxpose.xlu0.b32.start.end [1/1] (short) %v1381_v12, 128 }
 0x20c   : > { %v1448_v6 = vpop.trf.xlu0 }
 0x20d   : > { %1480 = vst.msk [vmem:[%s4002_s28 + $0xf8] sm:$0xff] %vm1163_vm1, %v1448_v6 }
 0x20e   : > { %v1625_v42 = vpop.trf.xlu1 }
 0x20f   : > { %3362 = vst.msk [vmem:[%s4002_s28 + $0x180] sm:$0xff] %vm1163_vm1, %v1625_v42 }
 0x210   : > { %v1593_v44 = vpop.trf.xlu0 }
 0x211   : > { %3346 = vst.msk [vmem:[%s4002_s28 + $0x100] sm:$0xff] %vm1163_vm1, %v1593_v44 }
 0x212   : > { %v1626_v45 = vpop.trf.xlu1 }
 0x213   : > { %3363 = vst.msk [vmem:[%s4002_s28 + $0x188] sm:$0xff] %vm1163_vm1, %v1626_v45 }
 0x214   : > { %v1594_v46 = vpop.trf.xlu0 }
 0x215   : > { %3347 = vst.msk [vmem:[%s4002_s28 + $0x108] sm:$0xff] %vm1163_vm1, %v1594_v46 }
 0x216   : > { %v1627_v47 = vpop.trf.xlu1 }
 0x217   : > { %3364 = vst.msk [vmem:[%s4002_s28 + $0x190] sm:$0xff] %vm1163_vm1, %v1627_v47 }
 0x218   : > { %v1595_v43 = vpop.trf.xlu0 }
 0x219   : > { %3348 = vst.msk [vmem:[%s4002_s28 + $0x110] sm:$0xff] %vm1163_vm1, %v1595_v43 }
 0x21a   : > { %v1628_v38 = vpop.trf.xlu1 }
 0x21b   : > { %3365 = vst.msk [vmem:[%s4002_s28 + $0x198] sm:$0xff] %vm1163_vm1, %v1628_v38 }
 0x21c   : > { %v1596_v33 = vpop.trf.xlu0 }
 0x21d   : > { %3349 = vst.msk [vmem:[%s4002_s28 + $0x118] sm:$0xff] %vm1163_vm1, %v1596_v33 }
 0x21e   : > { %v1629_v48 = vpop.trf.xlu1 }
 0x21f   : > { %3366 = vst.msk [vmem:[%s4002_s28 + $0x1a0] sm:$0xff] %vm1163_vm1, %v1629_v48 }
 0x220   : > { %v1597_v49 = vpop.trf.xlu0 }
 0x221   : > { %3350 = vst.msk [vmem:[%s4002_s28 + $0x120] sm:$0xff] %vm1163_vm1, %v1597_v49 }
 0x222   : > { %v1630_v50 = vpop.trf.xlu1 }
 0x223   : > { %3367 = vst.msk [vmem:[%s4002_s28 + $0x1a8] sm:$0xff] %vm1163_vm1, %v1630_v50 }
 0x224   : > { %v1598_v51 = vpop.trf.xlu0 }
 0x225   : > { %3351 = vst.msk [vmem:[%s4002_s28 + $0x128] sm:$0xff] %vm1163_vm1, %v1598_v51 }
 0x226   : > { %v1631_v52 = vpop.trf.xlu1 }
 0x227   : > { %3368 = vst.msk [vmem:[%s4002_s28 + $0x1b0] sm:$0xff] %vm1163_vm1, %v1631_v52 }
 0x228   : > { %v1599_v53 = vpop.trf.xlu0 }
 0x229   : > { %3352 = vst.msk [vmem:[%s4002_s28 + $0x130] sm:$0xff] %vm1163_vm1, %v1599_v53 }
 0x22a   : > { %v1632_v54 = vpop.trf.xlu1 }
 0x22b   : > { %3369 = vst.msk [vmem:[%s4002_s28 + $0x1b8] sm:$0xff] %vm1163_vm1, %v1632_v54 }
 0x22c   : > { %v1600_v55 = vpop.trf.xlu0 }
 0x22d   : > { %3353 = vst.msk [vmem:[%s4002_s28 + $0x138] sm:$0xff] %vm1163_vm1, %v1600_v55 }
 0x22e   : > { %v1633_v15 = vpop.trf.xlu1 }
 0x22f   : > { %3370 = vst.msk [vmem:[%s4002_s28 + $0x1c0] sm:$0xff] %vm1163_vm1, %v1633_v15 }
 0x230   : > { %v1601_v17 = vpop.trf.xlu0 }
 0x231   : > { %3354 = vst.msk [vmem:[%s4002_s28 + $0x140] sm:$0xff] %vm1163_vm1, %v1601_v17 }
 0x232   : > { %v1634_v56 = vpop.trf.xlu1 }
 0x233   : > { %3371 = vst.msk [vmem:[%s4002_s28 + $0x1c8] sm:$0xff] %vm1163_vm1, %v1634_v56 }
 0x234   : > { %v1602_v57 = vpop.trf.xlu0 }
 0x235   : > { %3355 = vst.msk [vmem:[%s4002_s28 + $0x148] sm:$0xff] %vm1163_vm1, %v1602_v57 }
 0x236   : > { %v1635_v59 = vpop.trf.xlu1 }
 0x237   : > { %3372 = vst.msk [vmem:[%s4002_s28 + $0x1d0] sm:$0xff] %vm1163_vm1, %v1635_v59 }
 0x238   : > { %v1603_v24 = vpop.trf.xlu0 }
 0x239   : > { %3356 = vst.msk [vmem:[%s4002_s28 + $0x150] sm:$0xff] %vm1163_vm1, %v1603_v24 }
 0x23a   : > { %v1636_v60 = vpop.trf.xlu1 }
 0x23b   : > { %3373 = vst.msk [vmem:[%s4002_s28 + $0x1d8] sm:$0xff] %vm1163_vm1, %v1636_v60 }
 0x23c   : > { %v1604_v58 = vpop.trf.xlu0 }
 0x23d   : > { %3357 = vst.msk [vmem:[%s4002_s28 + $0x158] sm:$0xff] %vm1163_vm1, %v1604_v58 }
 0x23e   : > { %v1637_v61 = vpop.trf.xlu1 }
 0x23f   : > { %3374 = vst.msk [vmem:[%s4002_s28 + $0x1e0] sm:$0xff] %vm1163_vm1, %v1637_v61 }
 0x240   : > { %v1605_v62 = vpop.trf.xlu0 }
 0x241   : > { %3358 = vst.msk [vmem:[%s4002_s28 + $0x160] sm:$0xff] %vm1163_vm1, %v1605_v62 }
 0x242   : > { %v1638_v63 = vpop.trf.xlu1 }
 0x243   : > { %3375 = vst.msk [vmem:[%s4002_s28 + $0x1e8] sm:$0xff] %vm1163_vm1, %v1638_v63 }
 0x244   : > { %v1606_v0 = vpop.trf.xlu0 }
 0x245   : > { %3359 = vst.msk [vmem:[%s4002_s28 + $0x168] sm:$0xff] %vm1163_vm1, %v1606_v0 }
 0x246   : > { %v1639_v1 = vpop.trf.xlu1  ;;  %1803 = vxpose.xlu1.b32.start.end [1/1] (short) %v4102_v40, 128 }
 0x247   : > { %3376 = vst.msk [vmem:[%s4002_s28 + $0x1f0] sm:$0xff] %vm1163_vm1, %v1639_v1 }
 0x248   : > { %v1607_v2 = vpop.trf.xlu0  ;;  %1771 = vxpose.xlu0.b32.start.end [1/1] (short) %v4096_v34, 128 }
 0x249   : > { %3360 = vst.msk [vmem:[%s4002_s28 + $0x170] sm:$0xff] %vm1163_vm1, %v1607_v2 }
 0x24a   : > { %v1640_v3 = vpop.trf.xlu1 }
 0x24b   : > { %3377 = vst.msk [vmem:[%s4002_s28 + $0x1f8] sm:$0xff] %vm1163_vm1, %v1640_v3 }
 0x24c   : > { %v1608_v4 = vpop.trf.xlu0 }
 0x24d   : > { %3361 = vst.msk [vmem:[%s4002_s28 + $0x178] sm:$0xff] %vm1163_vm1, %v1608_v4 }
 0x24e   : > { %v1529_v5 = vpop.trf.xlu1 }
 0x24f   : > { %1561 = vst.msk [vmem:[%s4034_s21 + $0x80] sm:$0xff] %vm1163_vm1, %v1529_v5 }
 0x250   : > { %v1497_v40 = vpop.trf.xlu0 }
 0x251   : > { %1545 = vst.msk [vmem:[%s4034_s21] sm:$0xff] %vm1163_vm1, %v1497_v40 }
 0x252   : > { %v1530_v34 = vpop.trf.xlu1 }
 0x253   : > { %1562 = vst.msk [vmem:[%s4034_s21 + $0x88] sm:$0xff] %vm1163_vm1, %v1530_v34 }
 0x254   : > { %v1498_v7 = vpop.trf.xlu0 }
 0x255   : > { %1546 = vst.msk [vmem:[%s4034_s21 + $0x8] sm:$0xff] %vm1163_vm1, %v1498_v7 }
 0x256   : > { %v1531_v8 = vpop.trf.xlu1 }
 0x257   : > { %1563 = vst.msk [vmem:[%s4034_s21 + $0x90] sm:$0xff] %vm1163_vm1, %v1531_v8 }
 0x258   : > { %v1499_v9 = vpop.trf.xlu0 }
 0x259   : > { %1547 = vst.msk [vmem:[%s4034_s21 + $0x10] sm:$0xff] %vm1163_vm1, %v1499_v9 }
 0x25a   : > { %v1532_v10 = vpop.trf.xlu1 }
 0x25b   : > { %1564 = vst.msk [vmem:[%s4034_s21 + $0x98] sm:$0xff] %vm1163_vm1, %v1532_v10 }
 0x25c   : > { %v1500_v11 = vpop.trf.xlu0 }
 0x25d   : > { %1548 = vst.msk [vmem:[%s4034_s21 + $0x18] sm:$0xff] %vm1163_vm1, %v1500_v11 }
 0x25e   : > { %v1533_v13 = vpop.trf.xlu1 }
 0x25f   : > { %1565 = vst.msk [vmem:[%s4034_s21 + $0xa0] sm:$0xff] %vm1163_vm1, %v1533_v13 }
 0x260   : > { %v1501_v14 = vpop.trf.xlu0 }
 0x261   : > { %1549 = vst.msk [vmem:[%s4034_s21 + $0x20] sm:$0xff] %vm1163_vm1, %v1501_v14 }
 0x262   : > { %v1534_v18 = vpop.trf.xlu1 }
 0x263   : > { %1566 = vst.msk [vmem:[%s4034_s21 + $0xa8] sm:$0xff] %vm1163_vm1, %v1534_v18 }
 0x264   : > { %v1502_v16 = vpop.trf.xlu0 }
 0x265   : > { %1550 = vst.msk [vmem:[%s4034_s21 + $0x28] sm:$0xff] %vm1163_vm1, %v1502_v16 }
 0x266   : > { %v1535_v23 = vpop.trf.xlu1 }
 0x267   : > { %1567 = vst.msk [vmem:[%s4034_s21 + $0xb0] sm:$0xff] %vm1163_vm1, %v1535_v23 }
 0x268   : > { %v1503_v27 = vpop.trf.xlu0 }
 0x269   : > { %1551 = vst.msk [vmem:[%s4034_s21 + $0x30] sm:$0xff] %vm1163_vm1, %v1503_v27 }
 0x26a   : > { %v1536_v21 = vpop.trf.xlu1 }
 0x26b   : > { %1568 = vst.msk [vmem:[%s4034_s21 + $0xb8] sm:$0xff] %vm1163_vm1, %v1536_v21 }
 0x26c   : > { %v1504_v30 = vpop.trf.xlu0 }
 0x26d   : > { %1552 = vst.msk [vmem:[%s4034_s21 + $0x38] sm:$0xff] %vm1163_vm1, %v1504_v30 }
 0x26e   : > { %v1537_v31 = vpop.trf.xlu1 }
 0x26f   : > { %1569 = vst.msk [vmem:[%s4034_s21 + $0xc0] sm:$0xff] %vm1163_vm1, %v1537_v31 }
 0x270   : > { %v1505_v32 = vpop.trf.xlu0 }
 0x271   : > { %1553 = vst.msk [vmem:[%s4034_s21 + $0x40] sm:$0xff] %vm1163_vm1, %v1505_v32 }
 0x272   : > { %v1538_v36 = vpop.trf.xlu1 }
 0x273   : > { %1570 = vst.msk [vmem:[%s4034_s21 + $0xc8] sm:$0xff] %vm1163_vm1, %v1538_v36 }
 0x274   : > { %v1506_v28 = vpop.trf.xlu0 }
 0x275   : > { %1554 = vst.msk [vmem:[%s4034_s21 + $0x48] sm:$0xff] %vm1163_vm1, %v1506_v28 }
 0x276   : > { %v1539_v37 = vpop.trf.xlu1 }
 0x277   : > { %1571 = vst.msk [vmem:[%s4034_s21 + $0xd0] sm:$0xff] %vm1163_vm1, %v1539_v37 }
 0x278   : > { %v1507_v39 = vpop.trf.xlu0 }
 0x279   : > { %1555 = vst.msk [vmem:[%s4034_s21 + $0x50] sm:$0xff] %vm1163_vm1, %v1507_v39 }
 0x27a   : > { %v1540_v26 = vpop.trf.xlu1 }
 0x27b   : > { %1572 = vst.msk [vmem:[%s4034_s21 + $0xd8] sm:$0xff] %vm1163_vm1, %v1540_v26 }
 0x27c   : > { %v1508_v41 = vpop.trf.xlu0 }
 0x27d   : > { %1556 = vst.msk [vmem:[%s4034_s21 + $0x58] sm:$0xff] %vm1163_vm1, %v1508_v41 }
 0x27e   : > { %v1541_v25 = vpop.trf.xlu1 }
 0x27f   : > { %1573 = vst.msk [vmem:[%s4034_s21 + $0xe0] sm:$0xff] %vm1163_vm1, %v1541_v25 }
 0x280   : > { %v1509_v29 = vpop.trf.xlu0 }
 0x281   : > { %1557 = vst.msk [vmem:[%s4034_s21 + $0x60] sm:$0xff] %vm1163_vm1, %v1509_v29 }
 0x282   : > { %v1542_v20 = vpop.trf.xlu1 }
 0x283   : > { %1574 = vst.msk [vmem:[%s4034_s21 + $0xe8] sm:$0xff] %vm1163_vm1, %v1542_v20 }
 0x284   : > { %v1510_v12 = vpop.trf.xlu0 }
 0x285   : > { %1558 = vst.msk [vmem:[%s4034_s21 + $0x68] sm:$0xff] %vm1163_vm1, %v1510_v12 }
 0x286   : > { %v1543_v19 = vpop.trf.xlu1  ;;  %1900 = vxpose.xlu1.b32.start.end [1/1] (short) %v4125_v22, 128 }
 0x287   : > { %1575 = vst.msk [vmem:[%s4034_s21 + $0xf0] sm:$0xff] %vm1163_vm1, %v1543_v19 }
 0x288   : > { %v1511_v6 = vpop.trf.xlu0  ;;  %1868 = vxpose.xlu0.b32.start.end [1/1] (short) %v4121_v35, 128 }
 0x289   : > { %1559 = vst.msk [vmem:[%s4034_s21 + $0x70] sm:$0xff] %vm1163_vm1, %v1511_v6 }
 0x28a   : > { %v1544_v42 = vpop.trf.xlu1 }
 0x28b   : > { %1576 = vst.msk [vmem:[%s4034_s21 + $0xf8] sm:$0xff] %vm1163_vm1, %v1544_v42 }
 0x28c   : > { %v1512_v44 = vpop.trf.xlu0 }
 0x28d   : > { %1560 = vst.msk [vmem:[%s4034_s21 + $0x78] sm:$0xff] %vm1163_vm1, %v1512_v44 }
 0x28e   : > { %v1722_v45 = vpop.trf.xlu1 }
 0x28f   : > { %3394 = vst.msk [vmem:[%s4034_s21 + $0x180] sm:$0xff] %vm1163_vm1, %v1722_v45 }
 0x290   : > { %v1690_v22 = vpop.trf.xlu0 }
 0x291   : > { %3378 = vst.msk [vmem:[%s4034_s21 + $0x100] sm:$0xff] %vm1163_vm1, %v1690_v22 }
 0x292   : > { %v1723_v35 = vpop.trf.xlu1 }
 0x293   : > { %3395 = vst.msk [vmem:[%s4034_s21 + $0x188] sm:$0xff] %vm1163_vm1, %v1723_v35 }
 0x294   : > { %v1691_v46 = vpop.trf.xlu0 }
 0x295   : > { %3379 = vst.msk [vmem:[%s4034_s21 + $0x108] sm:$0xff] %vm1163_vm1, %v1691_v46 }
 0x296   : > { %v1724_v47 = vpop.trf.xlu1 }
 0x297   : > { %3396 = vst.msk [vmem:[%s4034_s21 + $0x190] sm:$0xff] %vm1163_vm1, %v1724_v47 }
 0x298   : > { %v1692_v43 = vpop.trf.xlu0 }
 0x299   : > { %3380 = vst.msk [vmem:[%s4034_s21 + $0x110] sm:$0xff] %vm1163_vm1, %v1692_v43 }
 0x29a   : > { %v1725_v38 = vpop.trf.xlu1 }
 0x29b   : > { %3397 = vst.msk [vmem:[%s4034_s21 + $0x198] sm:$0xff] %vm1163_vm1, %v1725_v38 }
 0x29c   : > { %v1693_v33 = vpop.trf.xlu0 }
 0x29d   : > { %3381 = vst.msk [vmem:[%s4034_s21 + $0x118] sm:$0xff] %vm1163_vm1, %v1693_v33 }
 0x29e   : > { %v1726_v48 = vpop.trf.xlu1 }
 0x29f   : > { %3398 = vst.msk [vmem:[%s4034_s21 + $0x1a0] sm:$0xff] %vm1163_vm1, %v1726_v48 }
 0x2a0   : > { %v1694_v49 = vpop.trf.xlu0 }
 0x2a1   : > { %3382 = vst.msk [vmem:[%s4034_s21 + $0x120] sm:$0xff] %vm1163_vm1, %v1694_v49 }
 0x2a2   : > { %v1727_v50 = vpop.trf.xlu1 }
 0x2a3   : > { %3399 = vst.msk [vmem:[%s4034_s21 + $0x1a8] sm:$0xff] %vm1163_vm1, %v1727_v50 }
 0x2a4   : > { %v1695_v51 = vpop.trf.xlu0 }
 0x2a5   : > { %3383 = vst.msk [vmem:[%s4034_s21 + $0x128] sm:$0xff] %vm1163_vm1, %v1695_v51 }
 0x2a6   : > { %v1728_v52 = vpop.trf.xlu1 }
 0x2a7   : > { %3400 = vst.msk [vmem:[%s4034_s21 + $0x1b0] sm:$0xff] %vm1163_vm1, %v1728_v52 }
 0x2a8   : > { %v1696_v53 = vpop.trf.xlu0 }
 0x2a9   : > { %3384 = vst.msk [vmem:[%s4034_s21 + $0x130] sm:$0xff] %vm1163_vm1, %v1696_v53 }
 0x2aa   : > { %v1729_v54 = vpop.trf.xlu1 }
 0x2ab   : > { %3401 = vst.msk [vmem:[%s4034_s21 + $0x1b8] sm:$0xff] %vm1163_vm1, %v1729_v54 }
 0x2ac   : > { %v1697_v55 = vpop.trf.xlu0 }
 0x2ad   : > { %3385 = vst.msk [vmem:[%s4034_s21 + $0x138] sm:$0xff] %vm1163_vm1, %v1697_v55 }
 0x2ae   : > { %v1730_v15 = vpop.trf.xlu1 }
 0x2af   : > { %3402 = vst.msk [vmem:[%s4034_s21 + $0x1c0] sm:$0xff] %vm1163_vm1, %v1730_v15 }
 0x2b0   : > { %v1698_v17 = vpop.trf.xlu0 }
 0x2b1   : > { %3386 = vst.msk [vmem:[%s4034_s21 + $0x140] sm:$0xff] %vm1163_vm1, %v1698_v17 }
 0x2b2   : > { %v1731_v56 = vpop.trf.xlu1 }
 0x2b3   : > { %3403 = vst.msk [vmem:[%s4034_s21 + $0x1c8] sm:$0xff] %vm1163_vm1, %v1731_v56 }
 0x2b4   : > { %v1699_v57 = vpop.trf.xlu0 }
 0x2b5   : > { %3387 = vst.msk [vmem:[%s4034_s21 + $0x148] sm:$0xff] %vm1163_vm1, %v1699_v57 }
 0x2b6   : > { %v1732_v59 = vpop.trf.xlu1 }
 0x2b7   : > { %3404 = vst.msk [vmem:[%s4034_s21 + $0x1d0] sm:$0xff] %vm1163_vm1, %v1732_v59 }
 0x2b8   : > { %v1700_v24 = vpop.trf.xlu0 }
 0x2b9   : > { %3388 = vst.msk [vmem:[%s4034_s21 + $0x150] sm:$0xff] %vm1163_vm1, %v1700_v24 }
 0x2ba   : > { %v1733_v60 = vpop.trf.xlu1 }
 0x2bb   : > { %3405 = vst.msk [vmem:[%s4034_s21 + $0x1d8] sm:$0xff] %vm1163_vm1, %v1733_v60 }
 0x2bc   : > { %v1701_v58 = vpop.trf.xlu0 }
 0x2bd   : > { %3389 = vst.msk [vmem:[%s4034_s21 + $0x158] sm:$0xff] %vm1163_vm1, %v1701_v58 }
 0x2be   : > { %v1734_v61 = vpop.trf.xlu1 }
 0x2bf   : > { %3406 = vst.msk [vmem:[%s4034_s21 + $0x1e0] sm:$0xff] %vm1163_vm1, %v1734_v61 }
 0x2c0   : > { %v1702_v62 = vpop.trf.xlu0 }
 0x2c1   : > { %3390 = vst.msk [vmem:[%s4034_s21 + $0x160] sm:$0xff] %vm1163_vm1, %v1702_v62 }
 0x2c2   : > { %v1735_v63 = vpop.trf.xlu1 }
 0x2c3   : > { %3407 = vst.msk [vmem:[%s4034_s21 + $0x1e8] sm:$0xff] %vm1163_vm1, %v1735_v63 }
 0x2c4   : > { %v1703_v0 = vpop.trf.xlu0 }
 0x2c5   : > { %3391 = vst.msk [vmem:[%s4034_s21 + $0x168] sm:$0xff] %vm1163_vm1, %v1703_v0 }
 0x2c6   : > { %v1736_v1 = vpop.trf.xlu1 }
 0x2c7   : > { %3408 = vst.msk [vmem:[%s4034_s21 + $0x1f0] sm:$0xff] %vm1163_vm1, %v1736_v1 }
 0x2c8   : > { %v1704_v2 = vpop.trf.xlu0 }
 0x2c9   : > { %3392 = vst.msk [vmem:[%s4034_s21 + $0x170] sm:$0xff] %vm1163_vm1, %v1704_v2 }
 0x2ca   : > { %v1737_v3 = vpop.trf.xlu1 }
 0x2cb   : > { %3409 = vst.msk [vmem:[%s4034_s21 + $0x1f8] sm:$0xff] %vm1163_vm1, %v1737_v3 }
 0x2cc   : > { %v1705_v4 = vpop.trf.xlu0 }
 0x2cd   : > { %3393 = vst.msk [vmem:[%s4034_s21 + $0x178] sm:$0xff] %vm1163_vm1, %v1705_v4 }
 0x2ce   : > { %v1819_v5 = vpop.trf.xlu1 }
 0x2cf   : > { %3426 = vst.msk [vmem:[%s4002_s28 + $0x280] sm:$0xff] %vm1163_vm1, %v1819_v5 }
 0x2d0   : > { %v1787_v40 = vpop.trf.xlu0 }
 0x2d1   : > { %3410 = vst.msk [vmem:[%s4002_s28 + $0x200] sm:$0xff] %vm1163_vm1, %v1787_v40 }
 0x2d2   : > { %v1820_v34 = vpop.trf.xlu1 }
 0x2d3   : > { %3427 = vst.msk [vmem:[%s4002_s28 + $0x288] sm:$0xff] %vm1163_vm1, %v1820_v34 }
 0x2d4   : > { %v1788_v7 = vpop.trf.xlu0 }
 0x2d5   : > { %3411 = vst.msk [vmem:[%s4002_s28 + $0x208] sm:$0xff] %vm1163_vm1, %v1788_v7 }
 0x2d6   : > { %v1821_v8 = vpop.trf.xlu1 }
 0x2d7   : > { %3428 = vst.msk [vmem:[%s4002_s28 + $0x290] sm:$0xff] %vm1163_vm1, %v1821_v8 }
 0x2d8   : > { %v1789_v9 = vpop.trf.xlu0 }
 0x2d9   : > { %3412 = vst.msk [vmem:[%s4002_s28 + $0x210] sm:$0xff] %vm1163_vm1, %v1789_v9 }
 0x2da   : > { %v1822_v10 = vpop.trf.xlu1 }
 0x2db   : > { %3429 = vst.msk [vmem:[%s4002_s28 + $0x298] sm:$0xff] %vm1163_vm1, %v1822_v10 }
 0x2dc   : > { %v1790_v11 = vpop.trf.xlu0 }
 0x2dd   : > { %3413 = vst.msk [vmem:[%s4002_s28 + $0x218] sm:$0xff] %vm1163_vm1, %v1790_v11 }
 0x2de   : > { %v1823_v13 = vpop.trf.xlu1 }
 0x2df   : > { %3430 = vst.msk [vmem:[%s4002_s28 + $0x2a0] sm:$0xff] %vm1163_vm1, %v1823_v13 }
 0x2e0   : > { %v1791_v14 = vpop.trf.xlu0 }
 0x2e1   : > { %3414 = vst.msk [vmem:[%s4002_s28 + $0x220] sm:$0xff] %vm1163_vm1, %v1791_v14 }
 0x2e2   : > { %v1824_v18 = vpop.trf.xlu1 }
 0x2e3   : > { %3431 = vst.msk [vmem:[%s4002_s28 + $0x2a8] sm:$0xff] %vm1163_vm1, %v1824_v18 }
 0x2e4   : > { %v1792_v16 = vpop.trf.xlu0 }
 0x2e5   : > { %3415 = vst.msk [vmem:[%s4002_s28 + $0x228] sm:$0xff] %vm1163_vm1, %v1792_v16 }
 0x2e6   : > { %v1825_v23 = vpop.trf.xlu1 }
 0x2e7   : > { %3432 = vst.msk [vmem:[%s4002_s28 + $0x2b0] sm:$0xff] %vm1163_vm1, %v1825_v23 }
 0x2e8   : > { %v1793_v27 = vpop.trf.xlu0 }
 0x2e9   : > { %3416 = vst.msk [vmem:[%s4002_s28 + $0x230] sm:$0xff] %vm1163_vm1, %v1793_v27 }
 0x2ea   : > { %v1826_v21 = vpop.trf.xlu1 }
 0x2eb   : > { %3433 = vst.msk [vmem:[%s4002_s28 + $0x2b8] sm:$0xff] %vm1163_vm1, %v1826_v21 }
 0x2ec   : > { %v1794_v30 = vpop.trf.xlu0 }
 0x2ed   : > { %3417 = vst.msk [vmem:[%s4002_s28 + $0x238] sm:$0xff] %vm1163_vm1, %v1794_v30 }
 0x2ee   : > { %v1827_v31 = vpop.trf.xlu1 }
 0x2ef   : > { %3434 = vst.msk [vmem:[%s4002_s28 + $0x2c0] sm:$0xff] %vm1163_vm1, %v1827_v31 }
 0x2f0   : > { %v1795_v32 = vpop.trf.xlu0 }
 0x2f1   : > { %3418 = vst.msk [vmem:[%s4002_s28 + $0x240] sm:$0xff] %vm1163_vm1, %v1795_v32 }
 0x2f2   : > { %v1828_v36 = vpop.trf.xlu1 }
 0x2f3   : > { %3435 = vst.msk [vmem:[%s4002_s28 + $0x2c8] sm:$0xff] %vm1163_vm1, %v1828_v36 }
 0x2f4   : > { %v1796_v28 = vpop.trf.xlu0 }
 0x2f5   : > { %3419 = vst.msk [vmem:[%s4002_s28 + $0x248] sm:$0xff] %vm1163_vm1, %v1796_v28 }
 0x2f6   : > { %v1829_v37 = vpop.trf.xlu1 }
 0x2f7   : > { %3436 = vst.msk [vmem:[%s4002_s28 + $0x2d0] sm:$0xff] %vm1163_vm1, %v1829_v37 }
 0x2f8   : > { %v1797_v39 = vpop.trf.xlu0 }
 0x2f9   : > { %3420 = vst.msk [vmem:[%s4002_s28 + $0x250] sm:$0xff] %vm1163_vm1, %v1797_v39 }
 0x2fa   : > { %v1830_v26 = vpop.trf.xlu1 }
 0x2fb   : > { %3437 = vst.msk [vmem:[%s4002_s28 + $0x2d8] sm:$0xff] %vm1163_vm1, %v1830_v26 }
 0x2fc   : > { %v1798_v41 = vpop.trf.xlu0 }
 0x2fd   : > { %3421 = vst.msk [vmem:[%s4002_s28 + $0x258] sm:$0xff] %vm1163_vm1, %v1798_v41 }
 0x2fe   : > { %v1831_v25 = vpop.trf.xlu1 }
 0x2ff   : > { %3438 = vst.msk [vmem:[%s4002_s28 + $0x2e0] sm:$0xff] %vm1163_vm1, %v1831_v25 }
 0x300   : > { %v1799_v29 = vpop.trf.xlu0 }
 0x301   : > { %3422 = vst.msk [vmem:[%s4002_s28 + $0x260] sm:$0xff] %vm1163_vm1, %v1799_v29 }
 0x302   : > { %v1832_v20 = vpop.trf.xlu1 }
 0x303   : > { %3439 = vst.msk [vmem:[%s4002_s28 + $0x2e8] sm:$0xff] %vm1163_vm1, %v1832_v20 }
 0x304   : > { %v1800_v12 = vpop.trf.xlu0 }
 0x305   : > { %3423 = vst.msk [vmem:[%s4002_s28 + $0x268] sm:$0xff] %vm1163_vm1, %v1800_v12 }
 0x306   : > { %v1833_v19 = vpop.trf.xlu1 }
 0x307   : > { %3440 = vst.msk [vmem:[%s4002_s28 + $0x2f0] sm:$0xff] %vm1163_vm1, %v1833_v19 }
 0x308   : > { %v1801_v6 = vpop.trf.xlu0 }
 0x309   : > { %3424 = vst.msk [vmem:[%s4002_s28 + $0x270] sm:$0xff] %vm1163_vm1, %v1801_v6 }
 0x30a   : > { %v1834_v42 = vpop.trf.xlu1 }
 0x30b   : > { %3441 = vst.msk [vmem:[%s4002_s28 + $0x2f8] sm:$0xff] %vm1163_vm1, %v1834_v42 }
 0x30c   : > { %v1802_v44 = vpop.trf.xlu0 }
 0x30d   : > { %3425 = vst.msk [vmem:[%s4002_s28 + $0x278] sm:$0xff] %vm1163_vm1, %v1802_v44 }
 0x30e   : > { %v1916_v45 = vpop.trf.xlu1 }
 0x30f   : > { %3458 = vst.msk [vmem:[%s4034_s21 + $0x280] sm:$0xff] %vm1163_vm1, %v1916_v45 }
 0x310   : > { %v1884_v22 = vpop.trf.xlu0 }
 0x311   : > { %3442 = vst.msk [vmem:[%s4034_s21 + $0x200] sm:$0xff] %vm1163_vm1, %v1884_v22 }
 0x312   : > { %v1917_v35 = vpop.trf.xlu1 }
 0x313   : > { %3459 = vst.msk [vmem:[%s4034_s21 + $0x288] sm:$0xff] %vm1163_vm1, %v1917_v35 }
 0x314   : > { %v1885_v46 = vpop.trf.xlu0 }
 0x315   : > { %3443 = vst.msk [vmem:[%s4034_s21 + $0x208] sm:$0xff] %vm1163_vm1, %v1885_v46 }
 0x316   : > { %v1918_v47 = vpop.trf.xlu1 }
 0x317   : > { %3460 = vst.msk [vmem:[%s4034_s21 + $0x290] sm:$0xff] %vm1163_vm1, %v1918_v47 }
 0x318   : > { %v1886_v43 = vpop.trf.xlu0 }
 0x319   : > { %3444 = vst.msk [vmem:[%s4034_s21 + $0x210] sm:$0xff] %vm1163_vm1, %v1886_v43 }
 0x31a   : > { %v1919_v38 = vpop.trf.xlu1 }
 0x31b   : > { %3461 = vst.msk [vmem:[%s4034_s21 + $0x298] sm:$0xff] %vm1163_vm1, %v1919_v38 }
 0x31c   : > { %v1887_v33 = vpop.trf.xlu0 }
 0x31d   : > { %3445 = vst.msk [vmem:[%s4034_s21 + $0x218] sm:$0xff] %vm1163_vm1, %v1887_v33 }
 0x31e   : > { %v1920_v48 = vpop.trf.xlu1 }
 0x31f   : > { %3462 = vst.msk [vmem:[%s4034_s21 + $0x2a0] sm:$0xff] %vm1163_vm1, %v1920_v48 }
 0x320   : > { %v1888_v49 = vpop.trf.xlu0 }
 0x321   : > { %3446 = vst.msk [vmem:[%s4034_s21 + $0x220] sm:$0xff] %vm1163_vm1, %v1888_v49 }
 0x322   : > { %v1921_v50 = vpop.trf.xlu1 }
 0x323   : > { %3463 = vst.msk [vmem:[%s4034_s21 + $0x2a8] sm:$0xff] %vm1163_vm1, %v1921_v50 }
 0x324   : > { %v1889_v51 = vpop.trf.xlu0 }
 0x325   : > { %3447 = vst.msk [vmem:[%s4034_s21 + $0x228] sm:$0xff] %vm1163_vm1, %v1889_v51 }
 0x326   : > { %v1922_v52 = vpop.trf.xlu1 }
 0x327   : > { %3464 = vst.msk [vmem:[%s4034_s21 + $0x2b0] sm:$0xff] %vm1163_vm1, %v1922_v52 }
 0x328   : > { %v1890_v53 = vpop.trf.xlu0 }
 0x329   : > { %3448 = vst.msk [vmem:[%s4034_s21 + $0x230] sm:$0xff] %vm1163_vm1, %v1890_v53 }
 0x32a   : > { %v1923_v54 = vpop.trf.xlu1 }
 0x32b   : > { %3465 = vst.msk [vmem:[%s4034_s21 + $0x2b8] sm:$0xff] %vm1163_vm1, %v1923_v54 }
 0x32c   : > { %v1891_v55 = vpop.trf.xlu0 }
 0x32d   : > { %3449 = vst.msk [vmem:[%s4034_s21 + $0x238] sm:$0xff] %vm1163_vm1, %v1891_v55 }
 0x32e   : > { %v1924_v15 = vpop.trf.xlu1 }
 0x32f   : > { %3466 = vst.msk [vmem:[%s4034_s21 + $0x2c0] sm:$0xff] %vm1163_vm1, %v1924_v15 }
 0x330   : > { %v1892_v17 = vpop.trf.xlu0 }
 0x331   : > { %3450 = vst.msk [vmem:[%s4034_s21 + $0x240] sm:$0xff] %vm1163_vm1, %v1892_v17 }
 0x332   : > { %v1925_v56 = vpop.trf.xlu1 }
 0x333   : > { %3467 = vst.msk [vmem:[%s4034_s21 + $0x2c8] sm:$0xff] %vm1163_vm1, %v1925_v56 }
 0x334   : > { %v1893_v57 = vpop.trf.xlu0 }
 0x335   : > { %3451 = vst.msk [vmem:[%s4034_s21 + $0x248] sm:$0xff] %vm1163_vm1, %v1893_v57 }
 0x336   : > { %v1926_v59 = vpop.trf.xlu1 }
 0x337   : > { %3468 = vst.msk [vmem:[%s4034_s21 + $0x2d0] sm:$0xff] %vm1163_vm1, %v1926_v59 }
 0x338   : > { %v1894_v24 = vpop.trf.xlu0 }
 0x339   : > { %3452 = vst.msk [vmem:[%s4034_s21 + $0x250] sm:$0xff] %vm1163_vm1, %v1894_v24 }
 0x33a   : > { %v1927_v60 = vpop.trf.xlu1 }
 0x33b   : > { %3469 = vst.msk [vmem:[%s4034_s21 + $0x2d8] sm:$0xff] %vm1163_vm1, %v1927_v60 }
 0x33c   : > { %v1895_v58 = vpop.trf.xlu0 }
 0x33d   : > { %3453 = vst.msk [vmem:[%s4034_s21 + $0x258] sm:$0xff] %vm1163_vm1, %v1895_v58 }
 0x33e   : > { %v1928_v61 = vpop.trf.xlu1 }
 0x33f   : > { %3470 = vst.msk [vmem:[%s4034_s21 + $0x2e0] sm:$0xff] %vm1163_vm1, %v1928_v61 }
 0x340   : > { %v1896_v62 = vpop.trf.xlu0 }
 0x341   : > { %3454 = vst.msk [vmem:[%s4034_s21 + $0x260] sm:$0xff] %vm1163_vm1, %v1896_v62 }
 0x342   : > { %v1929_v63 = vpop.trf.xlu1 }
 0x343   : > { %3471 = vst.msk [vmem:[%s4034_s21 + $0x2e8] sm:$0xff] %vm1163_vm1, %v1929_v63 }
 0x344   : > { %v1897_v0 = vpop.trf.xlu0 }
 0x345   : > { %3455 = vst.msk [vmem:[%s4034_s21 + $0x268] sm:$0xff] %vm1163_vm1, %v1897_v0 }
 0x346   : > { %v1930_v1 = vpop.trf.xlu1 }
 0x347   : > { %3472 = vst.msk [vmem:[%s4034_s21 + $0x2f0] sm:$0xff] %vm1163_vm1, %v1930_v1 }
 0x348   : > { %v1898_v2 = vpop.trf.xlu0 }
 0x349   : > { %3456 = vst.msk [vmem:[%s4034_s21 + $0x270] sm:$0xff] %vm1163_vm1, %v1898_v2 }
 0x34a   : > { %v1931_v3 = vpop.trf.xlu1 }
 0x34b   : > { %3473 = vst.msk [vmem:[%s4034_s21 + $0x2f8] sm:$0xff] %vm1163_vm1, %v1931_v3 }
 0x34c   : > { %v1899_v4 = vpop.trf.xlu0 }
 0x34d   : > { %3457 = vst.msk [vmem:[%s4034_s21 + $0x278] sm:$0xff] %vm1163_vm1, %v1899_v4 }
 0x34e PF: > { %p3474_p13 = scmp.ne.s32.totalorder %s4029_s12, 1 }
 0x34f   : > { %s4783_s7 = sld [smem:[#allocation17_spill]] (!%p3474_p13) }
 0x350   : > { %1968 = sbr.rel (%p3474_p13) target bundleno = 1287 (0x507), region = 76  ;;  %s4784_s4 = sld [smem:[#allocation20_spill]] (!%p3474_p13) }
 0x355   : > { %v3673_v5 = vld [vmem:[%s3963_s19] sm:$0xff]   ;;  %vm2006_vm2 = vcmask 130048   ;;  %v3675_v34 = vld [vmem:[%s4783_s7 + $0x8] ss:$0 sps:$4 sm:$0xff]   ;;  %v3787_v7 = vmov 0   ;;  %v3788_v11 = vmov 1  }
 0x356   : > { %v3674_v40 = vld [vmem:[%s4783_s7] sm:$0xff]   ;;  %3546 = vmatprep.subr.bf16.mxu0 %v3673_v5  ;;  %3663 = vset.pattern.permute.xlu0 %v3787_v7  ;;  %s4785_s20 = smov %s4784_s4  ;;  %v3789_v13 = vmov 2   ;;  %v3790_v14 = vmov 3   ;;  %v3791_v18 = vmov 4   ;;  %vm2193_vm3 = vcmask 64512  }
 0x357   : > { %v1974_v8 = vld [vmem:[%s4784_s4] sm:$0xff]  ;;  %3547 = vmatpush3.bf16.msra.mxu0 %v3673_v5  ;;  %3548 = vmatprep.mubr.msk.bf16.mxu0 %vm2006_vm2, %v3674_v40  ;;  %v1976_v9 = vld [vmem:[%s4785_s20 + $0x10] sm:$0xff]  ;;  %v1975_v10 = vld [vmem:[%s4785_s20 + $0x8] sm:$0xff] }
 0x358   : > { %1979 = vperm.xlu0 %3663, %v1974_v8   ;;  %3664 = vset.pattern.permute.xlu1 %v3787_v7  ;;  %v3483_v33 = vld [vmem:[%s3988_s0] ss:$0 sm:$0xff]  ;;  %v3484_v52 = vld [vmem:[%s3988_s0 + $0x1] ss:$0 sm:$0xff] }
 0x359   : > { %1989 = vperm.xlu1 %3664, %v1976_v9  }
 0x35a   : > { %3549 = vmatmul.mubr.msk.bf16.vlgmr.msra.gmra.mxu0 %vm2006_vm2, %v3675_v34 }
 0x35c   : > { %1984 = vperm.xlu0 %3663, %v1975_v10  }
 0x35d   : > { %3665 = vset.pattern.permute.xlu1 %v3788_v11 }
 0x35e   : > { %2080 = vperm.xlu1 %3665, %v1974_v8  }
 0x360   : > { %3666 = vset.pattern.permute.xlu0 %v3788_v11 }
 0x361   : > { %2084 = vperm.xlu0 %3666, %v1975_v10  }
 0x362   : > { %2088 = vperm.xlu1 %3665, %v1976_v9  }
 0x365   : > { %3668 = vset.pattern.permute.xlu0 %v3789_v13 }
 0x366   : > { %3667 = vset.pattern.permute.xlu1 %v3789_v13  ;;  %2102 = vperm.xlu0 %3668, %v1975_v10  }
 0x367   : > { %2098 = vperm.xlu1 %3667, %v1974_v8  }
 0x36a   : > { %3670 = vset.pattern.permute.xlu0 %v3790_v14 }
 0x36b   : > { %2106 = vperm.xlu1 %3667, %v1976_v9   ;;  %2121 = vperm.xlu0 %3670, %v1975_v10  }
 0x36f   : > { %3669 = vset.pattern.permute.xlu1 %v3790_v14  ;;  %3672 = vset.pattern.permute.xlu0 %v3791_v18 }
 0x370   : > { %2117 = vperm.xlu1 %3669, %v1974_v8   ;;  %2144 = vperm.xlu0 %3672, %v1975_v10  }
 0x374   : > { %2125 = vperm.xlu1 %3669, %v1976_v9  }
 0x378   : > { %3671 = vset.pattern.permute.xlu1 %v3791_v18 }
 0x379   : > { %2140 = vperm.xlu1 %3671, %v1974_v8  }
 0x37d   : > { %2148 = vperm.xlu1 %3671, %v1976_v9  }
 0x3d3   : > { %v1980_v16 = vpop.permute.xlu0 %1979 }
 0x3d4   : > { %v1990_v23 = vpop.permute.xlu1 %1989 }
 0x3d7   : > { %v1985_v28 = vpop.permute.xlu0 %1984 }
 0x3d9   : > { %v2081_v32 = vpop.permute.xlu1 %2080 }
 0x3dc   : > { %v2085_v44 = vpop.permute.xlu0 %2084 }
 0x3dd   : > { %v2089_v41 = vpop.permute.xlu1 %2088 }
 0x3e1   : > { %v2103_v35 = vpop.permute.xlu0 %2102 }
 0x3e2   : > { %v2099_v25 = vpop.permute.xlu1 %2098 }
 0x3e6   : > { %v2107_v6 = vpop.permute.xlu1 %2106  ;;  %v2122_v43 = vpop.permute.xlu0 %2121 }
 0x3e7   : > { %v2133_v62 = vmul.f32 %v3483_v33, %v2122_v43 }
 0x3eb   : > { %v2118_v22 = vpop.permute.xlu1 %2117  ;;  %v2145_v57 = vpop.permute.xlu0 %2144 }
 0x3ec   : > { %v2132_v55 = vmul.f32 %v3483_v33, %v2118_v22  ;;  %v2156_v63 = vmul.f32 %v3484_v52, %v2145_v57 }
 0x3ef   : > { %v2126_v46 = vpop.permute.xlu1 %2125 }
 0x3f0   : > { %v2134_v34 = vmul.f32 %v3483_v33, %v2126_v46 }
 0x3f4   : > { %v2141_v53 = vpop.permute.xlu1 %2140 }
 0x3f5   : > { %v2155_v15 = vmul.f32 %v3484_v52, %v2141_v53 }
 0x3f8   : > { %v2149_v7 = vpop.permute.xlu1 %2148 }
 0x3f9   : > { %v2157_v9 = vmul.f32 %v3484_v52, %v2149_v7 }
 0x41a   : > { %v3550_v27 = vpop.f32.mrf.mxu0 }
 0x41b   : > { %v2056_v29 = vadd.f32 %v3550_v27, %v1990_v23 }
 0x41c   : > { %v2047_v21 = vpop.f32.mrf.mxu0 }
 0x41d   : > { %v2048_v30 = vadd.f32 %v2047_v21, %v1980_v16  ;;  %v3482_v19 = vmul.f32 -1.442695, %v2056_v29 }
 0x41e   : > { %v3551_v31 = vpop.f32.mrf.mxu0 }
 0x41f   : > { %v3480_v36 = vmul.f32 -1.442695, %v2048_v30  ;;  %2161 = vxpose.xlu1.b32.start.end [1/1] (short) (narrow) %v2048_v30, 64 }
 0x420   : > { %v2050_v37 = vpop.f32.mrf.mxu0 }
 0x421   : > { %3676 = vpow2.f32 %v3480_v36  ;;  %v2051_v39 = vadd.f32 %v2050_v37, %v1985_v28 }
 0x423   : > { %v3481_v26 = vmul.f32 -1.442695, %v2051_v39  ;;  %2242 = vxpose.xlu0.b32.start.end [1/1] (short) (narrow) %v2051_v39, 64 }
 0x425   : > { %3678 = vpow2.f32 %v3481_v26 }
 0x42e   : > { %v3677_v20 = vpop.eup %3676 }
 0x42f   : > { %v2070_v12 = vadd.f32 1.0, %v3677_v20 }
 0x431   : > { %3680 = vrcp.f32 %v2070_v12 }
 0x432   : > { %v3679_v42 = vpop.eup %3678  ;;  %3682 = vpow2.f32 %v3482_v19 }
 0x433   : > { %v2071_v45 = vadd.f32 1.0, %v3679_v42 }
 0x435   : > { %3684 = vrcp.f32 %v2071_v45 }
 0x43e   : > { %v3681_v47 = vpop.eup %3680 }
 0x43f   : > { %v2094_v38 = vmul.f32 %v3681_v47, %v3681_v47  ;;  %v3683_v48 = vpop.eup %3682  ;;  %v2091_v49 = vmul.f32 %v3681_v47, %v2081_v32 }
 0x440   : > { %v2072_v56 = vadd.f32 1.0, %v3683_v48 }
 0x441   : > { %v2109_v50 = vmul.f32 %v2099_v25, %v2094_v38 }
 0x442   : > { %v3685_v51 = vpop.eup %3684  ;;  %3686 = vrcp.f32 %v2072_v56 }
 0x443   : > { %v2112_v54 = vadd.f32 %v2109_v50, %v2091_v49  ;;  %v2095_v17 = vmul.f32 %v3685_v51, %v3685_v51  ;;  %v2092_v24 = vmul.f32 %v3685_v51, %v2085_v44 }
 0x445   : > { %v2135_v59 = vadd.f32 %v2132_v55, %v2112_v54  ;;  %v2110_v60 = vmul.f32 %v2103_v35, %v2095_v17 }
 0x447   : > { %v2158_v58 = vadd.f32 %v2155_v15, %v2135_v59  ;;  %v2113_v61 = vadd.f32 %v2110_v60, %v2092_v24 }
 0x449   : > { %v2136_v0 = vadd.f32 %v2133_v62, %v2113_v61  ;;  %2202 = vxpose.xlu0.b32.start.end [1/1] (short) (narrow) %v2158_v58, 64 }
 0x44b   : > { %v2159_v1 = vadd.f32 %v2156_v63, %v2136_v0 }
 0x44d   : > { %2283 = vxpose.xlu1.b32.start.end [1/1] (short) (narrow) %v2159_v1, 64 }
 0x44f   : > { %v3687_v2 = vpop.eup %3686 }
 0x450   : > { %v2096_v3 = vmul.f32 %v3687_v2, %v3687_v2  ;;  %v2093_v5 = vmul.f32 %v3687_v2, %v2089_v41 }
 0x452   : > { %v2111_v4 = vmul.f32 %v2107_v6, %v2096_v3 }
 0x454   : > { %v2114_v40 = vadd.f32 %v2111_v4, %v2093_v5 }
 0x456   : > { %v2137_v8 = vadd.f32 %v2134_v34, %v2114_v40 }
 0x458   : > { %v2160_v10 = vadd.f32 %v2157_v9, %v2137_v8 }
 0x466   : > { %2324 = vxpose.xlu0.b32.start.end [1/1] (short) (narrow) %v2056_v29, 64 }
 0x46a   : > { %2365 = vxpose.xlu1.b32.start.end [1/1] (short) (narrow) %v2160_v10, 64 }
 0x49b   : > { %v2177_v11 = vpop.trf.xlu1 }
 0x49c   : > { %2194 = vst.msk [vmem:[%s4012_s27] sm:$0xff] %vm2193_vm3, %v2177_v11 }
 0x49f   : > { %v2258_v13 = vpop.trf.xlu0  ;;  %v2178_v14 = vpop.trf.xlu1 }
 0x4a0   : > { %3485 = vst.msk [vmem:[%s4012_s27 + $0x40] sm:$0xff] %vm2193_vm3, %v2258_v13  ;;  %2195 = vst.msk [vmem:[%s4012_s27 + $0x8] sm:$0xff] %vm2193_vm3, %v2178_v14 }
 0x4a3   : > { %v2259_v18 = vpop.trf.xlu0  ;;  %v2179_v16 = vpop.trf.xlu1 }
 0x4a4   : > { %3486 = vst.msk [vmem:[%s4012_s27 + $0x48] sm:$0xff] %vm2193_vm3, %v2259_v18  ;;  %2196 = vst.msk [vmem:[%s4012_s27 + $0x10] sm:$0xff] %vm2193_vm3, %v2179_v16 }
 0x4a7   : > { %v2260_v23 = vpop.trf.xlu0  ;;  %v2180_v27 = vpop.trf.xlu1 }
 0x4a8   : > { %3487 = vst.msk [vmem:[%s4012_s27 + $0x50] sm:$0xff] %vm2193_vm3, %v2260_v23  ;;  %2197 = vst.msk [vmem:[%s4012_s27 + $0x18] sm:$0xff] %vm2193_vm3, %v2180_v27 }
 0x4ab   : > { %v2261_v21 = vpop.trf.xlu0  ;;  %v2181_v30 = vpop.trf.xlu1 }
 0x4ac   : > { %3488 = vst.msk [vmem:[%s4012_s27 + $0x58] sm:$0xff] %vm2193_vm3, %v2261_v21  ;;  %2198 = vst.msk [vmem:[%s4012_s27 + $0x20] sm:$0xff] %vm2193_vm3, %v2181_v30 }
 0x4af   : > { %v2262_v31 = vpop.trf.xlu0  ;;  %v2182_v32 = vpop.trf.xlu1 }
 0x4b0   : > { %3489 = vst.msk [vmem:[%s4012_s27 + $0x60] sm:$0xff] %vm2193_vm3, %v2262_v31  ;;  %2199 = vst.msk [vmem:[%s4012_s27 + $0x28] sm:$0xff] %vm2193_vm3, %v2182_v32 }
 0x4b3   : > { %v2263_v36 = vpop.trf.xlu0  ;;  %v2183_v28 = vpop.trf.xlu1 }
 0x4b4   : > { %3490 = vst.msk [vmem:[%s4012_s27 + $0x68] sm:$0xff] %vm2193_vm3, %v2263_v36  ;;  %2200 = vst.msk [vmem:[%s4012_s27 + $0x30] sm:$0xff] %vm2193_vm3, %v2183_v28 }
 0x4b7   : > { %v2264_v37 = vpop.trf.xlu0  ;;  %v2184_v39 = vpop.trf.xlu1 }
 0x4b8   : > { %3491 = vst.msk [vmem:[%s4012_s27 + $0x70] sm:$0xff] %vm2193_vm3, %v2264_v37  ;;  %2201 = vst.msk [vmem:[%s4012_s27 + $0x38] sm:$0xff] %vm2193_vm3, %v2184_v39 }
 0x4bb   : > { %v2265_v26 = vpop.trf.xlu0 }
 0x4bc   : > { %3492 = vst.msk [vmem:[%s4012_s27 + $0x78] sm:$0xff] %vm2193_vm3, %v2265_v26 }
 0x4c5   : > { %v2218_v41 = vpop.trf.xlu0 }
 0x4c6   : > { %2234 = vst.msk [vmem:[%s4041_s1] sm:$0xff] %vm2193_vm3, %v2218_v41 }
 0x4c9   : > { %v2299_v25 = vpop.trf.xlu1  ;;  %v2219_v29 = vpop.trf.xlu0 }
 0x4ca   : > { %3493 = vst.msk [vmem:[%s4041_s1 + $0x40] sm:$0xff] %vm2193_vm3, %v2299_v25  ;;  %2235 = vst.msk [vmem:[%s4041_s1 + $0x8] sm:$0xff] %vm2193_vm3, %v2219_v29 }
 0x4cd   : > { %v2300_v20 = vpop.trf.xlu1  ;;  %v2220_v12 = vpop.trf.xlu0 }
 0x4ce   : > { %3494 = vst.msk [vmem:[%s4041_s1 + $0x48] sm:$0xff] %vm2193_vm3, %v2300_v20  ;;  %2236 = vst.msk [vmem:[%s4041_s1 + $0x10] sm:$0xff] %vm2193_vm3, %v2220_v12 }
 0x4d1   : > { %v2301_v19 = vpop.trf.xlu1  ;;  %v2221_v6 = vpop.trf.xlu0 }
 0x4d2   : > { %3495 = vst.msk [vmem:[%s4041_s1 + $0x50] sm:$0xff] %vm2193_vm3, %v2301_v19  ;;  %2237 = vst.msk [vmem:[%s4041_s1 + $0x18] sm:$0xff] %vm2193_vm3, %v2221_v6 }
 0x4d5   : > { %v2302_v42 = vpop.trf.xlu1  ;;  %v2222_v44 = vpop.trf.xlu0 }
 0x4d6   : > { %3496 = vst.msk [vmem:[%s4041_s1 + $0x58] sm:$0xff] %vm2193_vm3, %v2302_v42  ;;  %2238 = vst.msk [vmem:[%s4041_s1 + $0x20] sm:$0xff] %vm2193_vm3, %v2222_v44 }
 0x4d9   : > { %v2303_v45 = vpop.trf.xlu1  ;;  %v2223_v22 = vpop.trf.xlu0 }
 0x4da   : > { %3497 = vst.msk [vmem:[%s4041_s1 + $0x60] sm:$0xff] %vm2193_vm3, %v2303_v45  ;;  %2239 = vst.msk [vmem:[%s4041_s1 + $0x28] sm:$0xff] %vm2193_vm3, %v2223_v22 }
 0x4dd   : > { %v2304_v35 = vpop.trf.xlu1  ;;  %v2224_v46 = vpop.trf.xlu0 }
 0x4de   : > { %3498 = vst.msk [vmem:[%s4041_s1 + $0x68] sm:$0xff] %vm2193_vm3, %v2304_v35  ;;  %2240 = vst.msk [vmem:[%s4041_s1 + $0x30] sm:$0xff] %vm2193_vm3, %v2224_v46 }
 0x4e1   : > { %v2305_v47 = vpop.trf.xlu1  ;;  %v2225_v43 = vpop.trf.xlu0 }
 0x4e2   : > { %3499 = vst.msk [vmem:[%s4041_s1 + $0x70] sm:$0xff] %vm2193_vm3, %v2305_v47  ;;  %2241 = vst.msk [vmem:[%s4041_s1 + $0x38] sm:$0xff] %vm2193_vm3, %v2225_v43 }
 0x4e5   : > { %v2306_v38 = vpop.trf.xlu1  ;;  %v2340_v33 = vpop.trf.xlu0 }
 0x4e6   : > { %3500 = vst.msk [vmem:[%s4041_s1 + $0x78] sm:$0xff] %vm2193_vm3, %v2306_v38  ;;  %3501 = vst.msk [vmem:[%s4012_s27 + $0x80] sm:$0xff] %vm2193_vm3, %v2340_v33 }
 0x4e9   : > { %v2381_v48 = vpop.trf.xlu1  ;;  %v2341_v49 = vpop.trf.xlu0 }
 0x4ea   : > { %3509 = vst.msk [vmem:[%s4041_s1 + $0x80] sm:$0xff] %vm2193_vm3, %v2381_v48  ;;  %3502 = vst.msk [vmem:[%s4012_s27 + $0x88] sm:$0xff] %vm2193_vm3, %v2341_v49 }
 0x4ed   : > { %v2382_v50 = vpop.trf.xlu1  ;;  %v2342_v51 = vpop.trf.xlu0 }
 0x4ee   : > { %3510 = vst.msk [vmem:[%s4041_s1 + $0x88] sm:$0xff] %vm2193_vm3, %v2382_v50  ;;  %3503 = vst.msk [vmem:[%s4012_s27 + $0x90] sm:$0xff] %vm2193_vm3, %v2342_v51 }
 0x4f1   : > { %v2383_v52 = vpop.trf.xlu1  ;;  %v2343_v53 = vpop.trf.xlu0 }
 0x4f2   : > { %3511 = vst.msk [vmem:[%s4041_s1 + $0x90] sm:$0xff] %vm2193_vm3, %v2383_v52  ;;  %3504 = vst.msk [vmem:[%s4012_s27 + $0x98] sm:$0xff] %vm2193_vm3, %v2343_v53 }
 0x4f5   : > { %v2384_v54 = vpop.trf.xlu1  ;;  %v2344_v55 = vpop.trf.xlu0 }
 0x4f6   : > { %3512 = vst.msk [vmem:[%s4041_s1 + $0x98] sm:$0xff] %vm2193_vm3, %v2384_v54  ;;  %3505 = vst.msk [vmem:[%s4012_s27 + $0xa0] sm:$0xff] %vm2193_vm3, %v2344_v55 }
 0x4f9   : > { %v2385_v15 = vpop.trf.xlu1  ;;  %v2345_v17 = vpop.trf.xlu0 }
 0x4fa   : > { %3513 = vst.msk [vmem:[%s4041_s1 + $0xa0] sm:$0xff] %vm2193_vm3, %v2385_v15  ;;  %3506 = vst.msk [vmem:[%s4012_s27 + $0xa8] sm:$0xff] %vm2193_vm3, %v2345_v17 }
 0x4fd   : > { %v2386_v56 = vpop.trf.xlu1  ;;  %v2346_v57 = vpop.trf.xlu0 }
 0x4fe   : > { %3514 = vst.msk [vmem:[%s4041_s1 + $0xa8] sm:$0xff] %vm2193_vm3, %v2386_v56  ;;  %3507 = vst.msk [vmem:[%s4012_s27 + $0xb0] sm:$0xff] %vm2193_vm3, %v2346_v57 }
 0x501   : > { %v2387_v59 = vpop.trf.xlu1  ;;  %v2347_v24 = vpop.trf.xlu0 }
 0x502   : > { %3515 = vst.msk [vmem:[%s4041_s1 + $0xb0] sm:$0xff] %vm2193_vm3, %v2387_v59  ;;  %3508 = vst.msk [vmem:[%s4012_s27 + $0xb8] sm:$0xff] %vm2193_vm3, %v2347_v24 }
 0x505   : > { %v2388_v60 = vpop.trf.xlu1 }
 0x506   : > { %3516 = vst.msk [vmem:[%s4041_s1 + $0xb8] sm:$0xff] %vm2193_vm3, %v2388_v60 }
 0x507 PF: > { %p3517_p0 = scmp.ne.s32.totalorder %s4029_s12, 2 }
 0x508   : > { %s4786_s26 = sld [smem:[#allocation18_spill]] (!%p3517_p0) }
 0x509   : > { %2409 = sbr.rel (%p3517_p0) target bundleno = 1688 (0x698), region = 80  ;;  %s4788_s1 = sld [smem:[#allocation21_spill]] (!%p3517_p0) }
 0x50e   : > { %v3698_v58 = vld [vmem:[%s3972_s30 + $0x8] sm:$0xff]   ;;  %vm2455_vm4 = vcmask 261120   ;;  %v3699_v61 = vld [vmem:[%s3972_s30] sm:$0xff]   ;;  %s4787_s6 = smov %s4786_s26  ;;  %v3792_v63 = vmov 0   ;;  %v3793_v4 = vmov 1   ;;  %v3794_v5 = vmov 2  }
 0x50f   : > { %3552 = vmatprep.subr.bf16.mxu0 %v3698_v58  ;;  %v3700_v62 = vld [vmem:[%s4786_s26] sm:$0xff]   ;;  %3688 = vset.pattern.permute.xlu0 %v3792_v63  ;;  %s4789_s23 = smov %s4788_s1  ;;  %v3701_v2 = vld [vmem:[%s4787_s6 + $0x8] ss:$0 sps:$4 sm:$0xff]   ;;  %v3795_v40 = vmov 3   ;;  %v3796_v34 = vmov 4   ;;  %vm2642_vm5 = vcmask 64512  }
 0x510   : > { %3553 = vmatpush3.bf16.msra.mxu0 %v3698_v58  ;;  %v2417_v0 = vld [vmem:[%s4788_s1] sm:$0xff]  ;;  %3689 = vset.pattern.permute.xlu1 %v3792_v63  ;;  %v2419_v1 = vld [vmem:[%s4789_s23 + $0x10] sm:$0xff]  ;;  %v2418_v3 = vld [vmem:[%s4789_s23 + $0x8] sm:$0xff] }
 0x511   : > { %3554 = vmatprep.subr.bf16.mxu0 %v3699_v61  ;;  %3556 = vmatprep.mubr.msk.bf16.mxu0 %vm2455_vm4, %v3700_v62  ;;  %v3527_v35 = vld [vmem:[%s3993_s3] ss:$0 sm:$0xff]  ;;  %v3528_v33 = vld [vmem:[%s3993_s3 + $0x1] ss:$0 sm:$0xff] }
 0x512   : > { %2422 = vperm.xlu0 %3688, %v2417_v0   ;;  %2432 = vperm.xlu1 %3689, %v2419_v1  }
 0x514   : > { %3555 = vmatpush3.bf16.msra.mxu0 %v3699_v61 }
 0x516   : > { %2427 = vperm.xlu0 %3688, %v2418_v3   ;;  %3690 = vset.pattern.permute.xlu1 %v3793_v4 }
 0x517   : > { %3557 = vmatmul.mubr.msk.bf16.vlgmr.msra.gmra.mxu0 %vm2455_vm4, %v3701_v2  ;;  %2529 = vperm.xlu1 %3690, %v2417_v0  }
 0x51a   : > { %3691 = vset.pattern.permute.xlu0 %v3793_v4 }
 0x51b   : > { %2537 = vperm.xlu1 %3690, %v2419_v1   ;;  %2533 = vperm.xlu0 %3691, %v2418_v3  }
 0x51f   : > { %3692 = vset.pattern.permute.xlu1 %v3794_v5  ;;  %3693 = vset.pattern.permute.xlu0 %v3794_v5 }
 0x520   : > { %2547 = vperm.xlu1 %3692, %v2417_v0   ;;  %2551 = vperm.xlu0 %3693, %v2418_v3  }
 0x524   : > { %2555 = vperm.xlu1 %3692, %v2419_v1   ;;  %3695 = vset.pattern.permute.xlu0 %v3795_v40 }
 0x525   : > { %2570 = vperm.xlu0 %3695, %v2418_v3  }
 0x528   : > { %3694 = vset.pattern.permute.xlu1 %v3795_v40 }
 0x529   : > { %2566 = vperm.xlu1 %3694, %v2417_v0   ;;  %3697 = vset.pattern.permute.xlu0 %v3796_v34 }
 0x52a   : > { %2593 = vperm.xlu0 %3697, %v2418_v3  }
 0x52d   : > { %2574 = vperm.xlu1 %3694, %v2419_v1  }
 0x531   : > { %3696 = vset.pattern.permute.xlu1 %v3796_v34 }
 0x532   : > { %2589 = vperm.xlu1 %3696, %v2417_v0  }
 0x536   : > { %2597 = vperm.xlu1 %3696, %v2419_v1  }
 0x58d   : > { %v2433_v7 = vpop.permute.xlu1 %2432  ;;  %v2423_v8 = vpop.permute.xlu0 %2422 }
 0x591   : > { %v2428_v27 = vpop.permute.xlu0 %2427 }
 0x592   : > { %v2530_v16 = vpop.permute.xlu1 %2529 }
 0x596   : > { %v2538_v32 = vpop.permute.xlu1 %2537  ;;  %v2534_v29 = vpop.permute.xlu0 %2533 }
 0x59b   : > { %v2548_v36 = vpop.permute.xlu1 %2547  ;;  %v2552_v19 = vpop.permute.xlu0 %2551 }
 0x59f   : > { %v2556_v41 = vpop.permute.xlu1 %2555 }
 0x5a0   : > { %v2571_v45 = vpop.permute.xlu0 %2570 }
 0x5a1   : > { %v2582_v53 = vmul.f32 %v3527_v35, %v2571_v45 }
 0x5a4   : > { %v2567_v12 = vpop.permute.xlu1 %2566 }
 0x5a5   : > { %v2581_v50 = vmul.f32 %v3527_v35, %v2567_v12  ;;  %v2594_v54 = vpop.permute.xlu0 %2593 }
 0x5a6   : > { %v2605_v60 = vmul.f32 %v3528_v33, %v2594_v54 }
 0x5a8   : > { %v2575_v6 = vpop.permute.xlu1 %2574 }
 0x5a9   : > { %v2583_v63 = vmul.f32 %v3527_v35, %v2575_v6 }
 0x5ad   : > { %v2590_v48 = vpop.permute.xlu1 %2589 }
 0x5ae   : > { %v2604_v51 = vmul.f32 %v3528_v33, %v2590_v48 }
 0x5b1   : > { %v2598_v62 = vpop.permute.xlu1 %2597 }
 0x5b2   : > { %v2606_v2 = vmul.f32 %v3528_v33, %v2598_v62 }
 0x5d7   : > { %v3558_v9 = vpop.f32.mrf.mxu0 }
 0x5d8   : > { %v2505_v10 = vadd.f32 %v3558_v9, %v2433_v7 }
 0x5d9   : > { %v2496_v11 = vpop.f32.mrf.mxu0 }
 0x5da   : > { %v3526_v13 = vmul.f32 -1.442695, %v2505_v10  ;;  %v2497_v14 = vadd.f32 %v2496_v11, %v2423_v8 }
 0x5db   : > { %v3559_v18 = vpop.f32.mrf.mxu0 }
 0x5dc   : > { %3702 = vpow2.f32 %v3526_v13  ;;  %v3524_v23 = vmul.f32 -1.442695, %v2497_v14  ;;  %2610 = vxpose.xlu1.b32.start.end [1/1] (short) (narrow) %v2497_v14, 16 }
 0x5dd   : > { %v2499_v21 = vpop.f32.mrf.mxu0 }
 0x5de   : > { %3704 = vpow2.f32 %v3524_v23  ;;  %v2500_v30 = vadd.f32 %v2499_v21, %v2428_v27 }
 0x5e0   : > { %v3525_v31 = vmul.f32 -1.442695, %v2500_v30  ;;  %2679 = vxpose.xlu0.b32.start.end [1/1] (short) (narrow) %v2500_v30, 16 }
 0x5e1   : > { %2749 = vxpose.xlu1.b32.start.end [1/1] (short) (narrow) %v2505_v10, 16 }
 0x5e2   : > { %3706 = vpow2.f32 %v3525_v31 }
 0x5e9   : > { %v3703_v28 = vpop.eup %3702 }
 0x5ea   : > { %v2521_v37 = vadd.f32 1.0, %v3703_v28 }
 0x5eb   : > { %v3705_v39 = vpop.eup %3704 }
 0x5ec   : > { %v2519_v26 = vadd.f32 1.0, %v3705_v39  ;;  %3708 = vrcp.f32 %v2521_v37 }
 0x5ee   : > { %3710 = vrcp.f32 %v2519_v26 }
 0x5ef   : > { %v3707_v25 = vpop.eup %3706 }
 0x5f0   : > { %v2520_v20 = vadd.f32 1.0, %v3707_v25 }
 0x5f2   : > { %3712 = vrcp.f32 %v2520_v20 }
 0x5f9   : > { %v3709_v42 = vpop.eup %3708 }
 0x5fa   : > { %v2545_v43 = vmul.f32 %v3709_v42, %v3709_v42  ;;  %v2542_v57 = vmul.f32 %v3709_v42, %v2538_v32 }
 0x5fb   : > { %v3711_v44 = vpop.eup %3710 }
 0x5fc   : > { %v2543_v22 = vmul.f32 %v3711_v44, %v3711_v44  ;;  %v2540_v46 = vmul.f32 %v3711_v44, %v2530_v16  ;;  %v2560_v55 = vmul.f32 %v2556_v41, %v2545_v43 }
 0x5fe   : > { %v2558_v47 = vmul.f32 %v2548_v36, %v2543_v22  ;;  %v2563_v58 = vadd.f32 %v2560_v55, %v2542_v57 }
 0x5ff   : > { %v3713_v38 = vpop.eup %3712 }
 0x600   : > { %v2561_v49 = vadd.f32 %v2558_v47, %v2540_v46  ;;  %v2544_v52 = vmul.f32 %v3713_v38, %v3713_v38  ;;  %v2541_v17 = vmul.f32 %v3713_v38, %v2534_v29  ;;  %v2586_v1 = vadd.f32 %v2583_v63, %v2563_v58 }
 0x602   : > { %v2584_v15 = vadd.f32 %v2581_v50, %v2561_v49  ;;  %v2559_v56 = vmul.f32 %v2552_v19, %v2544_v52  ;;  %v2609_v3 = vadd.f32 %v2606_v2, %v2586_v1 }
 0x604   : > { %v2607_v59 = vadd.f32 %v2604_v51, %v2584_v15  ;;  %v2562_v24 = vadd.f32 %v2559_v56, %v2541_v17 }
 0x606   : > { %v2585_v61 = vadd.f32 %v2582_v53, %v2562_v24  ;;  %2645 = vxpose.xlu0.b32.start.end [1/1] (short) (narrow) %v2607_v59, 16 }
 0x608   : > { %v2608_v0 = vadd.f32 %v2605_v60, %v2585_v61 }
 0x60b   : > { %2714 = vxpose.xlu0.b32.start.end [1/1] (short) (narrow) %v2608_v0, 16 }
 0x610   : > { %2784 = vxpose.xlu0.b32.start.end [1/1] (short) (narrow) %v2609_v3, 16 }
 0x658   : > { %v2626_v4 = vpop.trf.xlu1 }
 0x659   : > { %2643 = vst.msk [vmem:[%s4024_s11] sm:$0xff] %vm2642_vm5, %v2626_v4 }
 0x65c   : > { %v2695_v5 = vpop.trf.xlu0  ;;  %v2627_v40 = vpop.trf.xlu1 }
 0x65d   : > { %3529 = vst.msk [vmem:[%s4024_s11 + $0x10] sm:$0xff] %vm2642_vm5, %v2695_v5  ;;  %2644 = vst.msk [vmem:[%s4024_s11 + $0x8] sm:$0xff] %vm2642_vm5, %v2627_v40 }
 0x660   : > { %v2696_v34 = vpop.trf.xlu0  ;;  %v2765_v7 = vpop.trf.xlu1 }
 0x661   : > { %3530 = vst.msk [vmem:[%s4024_s11 + $0x18] sm:$0xff] %vm2642_vm5, %v2696_v34  ;;  %3533 = vst.msk [vmem:[%s4024_s11 + $0x20] sm:$0xff] %vm2642_vm5, %v2765_v7 }
 0x664   : > { %v2766_v8 = vpop.trf.xlu1 }
 0x665   : > { %3534 = vst.msk [vmem:[%s4024_s11 + $0x28] sm:$0xff] %vm2642_vm5, %v2766_v8 }
 0x682   : > { %v2661_v9 = vpop.trf.xlu0 }
 0x683   : > { %2677 = vst.msk [vmem:[%s4048_s9] sm:$0xff] %vm2642_vm5, %v2661_v9 }
 0x686   : > { %v2662_v10 = vpop.trf.xlu0 }
 0x687   : > { %2678 = vst.msk [vmem:[%s4048_s9 + $0x8] sm:$0xff] %vm2642_vm5, %v2662_v10 }
 0x68a   : > { %v2730_v11 = vpop.trf.xlu0 }
 0x68b   : > { %3531 = vst.msk [vmem:[%s4048_s9 + $0x10] sm:$0xff] %vm2642_vm5, %v2730_v11 }
 0x68e   : > { %v2731_v13 = vpop.trf.xlu0 }
 0x68f   : > { %3532 = vst.msk [vmem:[%s4048_s9 + $0x18] sm:$0xff] %vm2642_vm5, %v2731_v13 }
 0x692   : > { %v2800_v14 = vpop.trf.xlu0 }
 0x693   : > { %3535 = vst.msk [vmem:[%s4048_s9 + $0x20] sm:$0xff] %vm2642_vm5, %v2800_v14 }
 0x696   : > { %v2801_v18 = vpop.trf.xlu0 }
 0x697   : > { %3536 = vst.msk [vmem:[%s4048_s9 + $0x28] sm:$0xff] %vm2642_vm5, %v2801_v18 }
 0x698 PF: > { %s4790_s11 = sld [smem:[#allocation8_spill]] }
 0x699   : > { %s4791_s1 = sld [smem:[#allocation6_spill]] }
 0x69a   : > { %s4792_s4 = sld [smem:[#allocation7_spill]] }
 0x69b   : > { %s4793_s26 = sld [smem:[#allocation9_spill]] }
 0x69c   : > { %s4794_s27 = sld [smem:[#allocation10_spill]] }
 0x69e   : > { %s40_s10 = sadd.s32 1, %s4790_s11  }
 0x69f   : > { %p37_p1 = scmp.ge.s32.totalorder %s40_s10, 8  }
 0x6a1   :  { %39 = sbr.rel (!%p37_p1) target bundleno = 49 (0x31), region = 198 }

</bundles_post_ra>
